<compile_context>
chip_gen: v5e
topology: v5e:2x2
jax: 0.10.0
libtpu: 0.0.40
codegen_flags: <defaults>
</compile_context>

<pallas_src>
import functools

import jax
import jax.numpy as jnp
from jax.experimental import pallas as pl
from jax.experimental.pallas import tpu as pltpu


def _leaky_relu(v, ns=0.01):
    # max(v, ns*v) == leaky_relu for 0 < ns < 1; avoids compare+select mask.
    return jnp.maximum(v, ns * v)


def draftnet_kernel(x_ref, w1_ref, w_ref, c_ref, out_ref):
    """One batch tile: 4 fused bf16 matmuls (f32 acc) + folded-BN f32 epilogues."""
    ss = out_ref.shape[1]
    c = c_ref[...]                                   # (4, ss) f32: [c1, c2, c3, b4]

    # Layer 1: single K=2*ss dot, LHS cast to bf16 at the dot (epilogue in f32).
    y = jnp.dot(x_ref[...].astype(jnp.bfloat16), w1_ref[...],
                preferred_element_type=jnp.float32)
    y = _leaky_relu(y + c[0:1, :])

    # Layers 2, 3 (BN folded into stacked bf16 weights / f32 biases).
    for k in range(2):
        y = jnp.dot(y.astype(jnp.bfloat16), w_ref[k],
                    preferred_element_type=jnp.float32)
        y = _leaky_relu(y + c[k + 1:k + 2, :])

    # Layer 4: linear only (relu4 unused in the original forward).
    y = jnp.dot(y.astype(jnp.bfloat16), w_ref[2],
                preferred_element_type=jnp.float32) + c[3:4, :]

    # Load pack only now, from the still-resident VMEM x tile (short live range).
    pack = x_ref[:, ss:]                             # (TILE_B, ss) f32
    out_ref[...] = (y * pack).astype(out_ref.dtype)


def fold_params(params):
    """Fold eval-mode BatchNorm into the Linear weights (f32), then cast to bf16."""
    (w1, b1, s1, t1,
     w2, b2, s2, t2,
     w3, b3, s3, t3,
     w4, b4) = params

    w1f = (w1 * s1).astype(jnp.bfloat16)                 # (2*ss, ss) column-scaled
    c1 = b1 * s1 + t1                                    # (1, ss) f32
    w2f = (w2 * s2).astype(jnp.bfloat16)
    c2 = b2 * s2 + t2
    w3f = (w3 * s3).astype(jnp.bfloat16)
    c3 = b3 * s3 + t3
    w4f = w4.astype(jnp.bfloat16)

    w_stack = jnp.stack([w2f, w3f, w4f], axis=0)         # (3, ss, ss) bf16
    c_stack = jnp.concatenate([c1, c2, c3, b4], axis=0)  # (4, ss) f32
    return w1f, w_stack, c_stack


@functools.partial(jax.jit, static_argnames=("ss", "tile_b"))
def draftnet_forward(x, w1f, w_stack, c_stack, *, ss, tile_b=512):
    B = x.shape[0]

    # Pick a batch tile that divides B (multiple of 8) so no jnp.pad copy of x is
    # needed; pad only as a last resort for ragged / tiny batches.
    tb = min(tile_b, B)
    tb -= tb % 8
    while tb >= 8 and B % tb != 0:
        tb -= 8
    if tb >= 8:
        B_pad = B
        x_in = x
    else:
        tb = min(tile_b, max(8, ((B + 7) // 8) * 8))
        B_pad = ((B + tb - 1) // tb) * tb
        x_in = jnp.pad(x, ((0, B_pad - B), (0, 0)))
    n_tiles = B_pad // tb

    # 4 matmuls per row: (2ss x ss) + 3 * (ss x ss).
    flops = 2 * B_pad * ss * ss * 5
    bytes_accessed = (B_pad * 2 * ss * 4 + B_pad * ss * 4   # x (f32), out (f32)
                      + w1f.size * 2 + w_stack.size * 2     # bf16 weights
                      + c_stack.size * 4)

    out = pl.pallas_call(
        draftnet_kernel,
        out_shape=jax.ShapeDtypeStruct((B_pad, ss), jnp.float32),
        grid=(n_tiles,),
        in_specs=[
            pl.BlockSpec((tb, 2 * ss), lambda i: (i, 0)),      # x: tiled over batch
            pl.BlockSpec((2 * ss, ss), lambda i: (0, 0)),      # W1' (bf16), resident
            pl.BlockSpec((3, ss, ss), lambda i: (0, 0, 0)),    # W2'/W3'/W4 slab (bf16)
            pl.BlockSpec((4, ss), lambda i: (0, 0)),           # biases (f32)
        ],
        out_specs=pl.BlockSpec((tb, ss), lambda i: (i, 0)),
        compiler_params=pltpu.CompilerParams(
            dimension_semantics=("parallel",),
        ),
        cost_estimate=pl.CostEstimate(
            flops=flops, transcendentals=0, bytes_accessed=bytes_accessed),
    )(x_in, w1f, w_stack, c_stack)

    return out[:B]


def init_params(key, ss):
    """Deterministic synthetic parameters mirroring the module's shapes."""
    eps = 1e-5
    keys = jax.random.split(key, 32)
    ki = iter(range(32))

    def lin(in_f, out_f):
        w = jax.random.normal(keys[next(ki)], (in_f, out_f), jnp.float32) * 0.05
        b = jax.random.normal(keys[next(ki)], (1, out_f), jnp.float32) * 0.05
        return w, b

    def bn(n):
        gamma = 1.0 + 0.1 * jax.random.normal(keys[next(ki)], (1, n), jnp.float32)
        beta = 0.1 * jax.random.normal(keys[next(ki)], (1, n), jnp.float32)
        mean = 0.1 * jax.random.normal(keys[next(ki)], (1, n), jnp.float32)
        var = jnp.abs(jax.random.normal(keys[next(ki)], (1, n), jnp.float32)) + 0.5
        scale = gamma / jnp.sqrt(var + eps)
        shift = beta - mean * scale
        return scale, shift

    w1, b1 = lin(2 * ss, ss)
    s1, t1 = bn(ss)
    w2, b2 = lin(ss, ss)
    s2, t2 = bn(ss)
    w3, b3 = lin(ss, ss)
    s3, t3 = bn(ss)
    w4, b4 = lin(ss, ss)
    return (w1, b1, s1, t1, w2, b2, s2, t2, w3, b3, s3, t3, w4, b4)


def reference_forward_f32(x, params, ss):
    """Pure-JAX f32 reference of the eval-mode PyTorch forward (use_features=False)."""
    (w1, b1, s1, t1, w2, b2, s2, t2, w3, b3, s3, t3, w4, b4) = params
    ns = 0.01
    lrelu = lambda v: jnp.where(v >= 0, v, ns * v)
    pack = x[:, ss:]
    y = lrelu((x @ w1 + b1) * s1 + t1)
    y = lrelu((y @ w2 + b2) * s2 + t2)
    y = lrelu((y @ w3 + b3) * s3 + t3)
    y = y @ w4 + b4
    return y * pack


def reference_forward_folded(x, w1f, w_stack, c_stack, ss):
    """Matched-precision reference using the same folded bf16 weights as the kernel."""
    pack = x[:, ss:]
    y = jnp.dot(x.astype(jnp.bfloat16), w1f, preferred_element_type=jnp.float32)
    y = _leaky_relu(y + c_stack[0:1, :])
    for k in range(2):
        y = jnp.dot(y.astype(jnp.bfloat16), w_stack[k],
                    preferred_element_type=jnp.float32)
        y = _leaky_relu(y + c_stack[k + 1:k + 2, :])
    y = jnp.dot(y.astype(jnp.bfloat16), w_stack[2],
                preferred_element_type=jnp.float32) + c_stack[3:4, :]
    return y * pack


if __name__ == "__main__":
    ss = 128       # number of cards in the set
    M = 16         # feature rows of set_tensor (unused in use_features=False path)
    B = 1024       # batch size
    TILE_B = 256   # 4 grid steps in the demo (>= 2 per TC on v7x megacore)

    key = jax.random.PRNGKey(0)
    k_x, k_pack, k_param, k_set = jax.random.split(key, 4)

    # Build x = [collection | pack]: collection counts >= 0, pack is 0/1.
    collection = jnp.abs(jax.random.normal(k_x, (B, ss), jnp.float32))
    pack = (jax.random.uniform(k_pack, (B, ss)) < 0.25).astype(jnp.float32)
    x = jnp.concatenate([collection, pack], axis=1)            # (B, 2*ss)

    # set_tensor (M x ss) exists in the module but is unused on this path.
    set_tensor = jax.random.normal(k_set, (M, ss), jnp.float32)
    del set_tensor

    params = init_params(k_param, ss)
    w1f, w_stack, c_stack = fold_params(params)

    out = draftnet_forward(x, w1f, w_stack, c_stack, ss=ss, tile_b=TILE_B)
    out = jax.block_until_ready(out)
    assert out.shape == (B, ss)

    # Tight check vs a matched-precision (same folded bf16 weights) reference.
    ref_folded = reference_forward_folded(x, w1f, w_stack, c_stack, ss)
    assert jnp.allclose(out, ref_folded, atol=2e-3, rtol=2e-3), \
        "mismatch vs matched-precision reference"

    # Loose sanity check vs the original f32 eval-mode semantics (bf16 weight cast
    # introduces ~0.2% relative error per layer).
    ref_f32 = reference_forward_f32(x, params, ss)
    assert jnp.allclose(out, ref_f32, atol=5e-2, rtol=5e-2), \
        "mismatch vs f32 reference"

    print("KERNEL_OK")
</pallas_src>

<mosaic_0001>
module attributes {stable_mosaic.version = 11 : i64} {
  func.func @draftnet_kernel(%arg0: i32, %arg1: memref<256x256xf32, #tpu.memory_space<vmem>>, %arg2: memref<256x128xbf16, #tpu.memory_space<vmem>>, %arg3: memref<3x128x128xbf16, #tpu.memory_space<vmem>>, %arg4: memref<4x128xf32, #tpu.memory_space<vmem>>, %arg5: memref<256x128xf32, #tpu.memory_space<vmem>>) attributes {dimension_semantics = [#tpu.dimension_semantics<parallel>], iteration_bounds = array<i64: 4>, scalar_prefetch = 0 : i64, scratch_operands = 0 : i64, tpu.core_type = #tpu.core_type<tc>, window_params = [{transform_indices = @transform_0, window_bounds = array<i64: 256, 256>}, {pipeline_mode = #tpu.pipeline_mode<synchronous>, transform_indices = @transform_1, window_bounds = array<i64: 256, 128>}, {pipeline_mode = #tpu.pipeline_mode<synchronous>, transform_indices = @transform_2, window_bounds = array<i64: 3, 128, 128>}, {pipeline_mode = #tpu.pipeline_mode<synchronous>, transform_indices = @transform_3, window_bounds = array<i64: 4, 128>}, {transform_indices = @transform_4, window_bounds = array<i64: 256, 128>}]} {
    %c0 = arith.constant 0 : index
    %c0_0 = arith.constant 0 : index
    %0 = vector.load %arg4[%c0, %c0_0] : memref<4x128xf32, #tpu.memory_space<vmem>>, vector<4x128xf32>
    %c0_1 = arith.constant 0 : index
    %c0_2 = arith.constant 0 : index
    %1 = vector.load %arg1[%c0_1, %c0_2] : memref<256x256xf32, #tpu.memory_space<vmem>>, vector<256x256xf32>
    %2 = arith.truncf %1 : vector<256x256xf32> to vector<256x256xbf16>
    %c0_3 = arith.constant 0 : index
    %c0_4 = arith.constant 0 : index
    %3 = vector.load %arg2[%c0_3, %c0_4] : memref<256x128xbf16, #tpu.memory_space<vmem>>, vector<256x128xbf16>
    %cst = arith.constant dense<0.000000e+00> : vector<256x128xf32>
    %4 = tpu.matmul %2, %3, %cst {dimension_numbers = #tpu.dot_dimension_numbers<[1], [0], [0], [1], [0, 0, 1, 1], [], []>} : vector<256x256xbf16>, vector<256x128xbf16>, vector<256x128xf32> -> vector<256x128xf32>
    %5 = vector.extract_strided_slice %0 {offsets = [0, 0], sizes = [1, 128], strides = [1, 1]} : vector<4x128xf32> to vector<1x128xf32>
    %6 = vector.broadcast %5 : vector<1x128xf32> to vector<256x128xf32>
    %7 = arith.addf %4, %6 : vector<256x128xf32>
    %cst_5 = arith.constant 0.00999999977 : f32
    %8 = vector.broadcast %cst_5 : f32 to vector<256x128xf32>
    %9 = arith.mulf %8, %7 : vector<256x128xf32>
    %10 = arith.maximumf %7, %9 : vector<256x128xf32>
    %11 = arith.truncf %10 : vector<256x128xf32> to vector<256x128xbf16>
    %c0_6 = arith.constant 0 : index
    %c0_7 = arith.constant 0 : index
    %c0_8 = arith.constant 0 : index
    %12 = vector.load %arg3[%c0_6, %c0_7, %c0_8] : memref<3x128x128xbf16, #tpu.memory_space<vmem>>, vector<1x128x128xbf16>
    %13 = vector.shape_cast %12 : vector<1x128x128xbf16> to vector<128x128xbf16>
    %cst_9 = arith.constant dense<0.000000e+00> : vector<256x128xf32>
    %14 = tpu.matmul %11, %13, %cst_9 {dimension_numbers = #tpu.dot_dimension_numbers<[1], [0], [0], [1], [0, 0, 1, 1], [], []>} : vector<256x128xbf16>, vector<128x128xbf16>, vector<256x128xf32> -> vector<256x128xf32>
    %15 = vector.extract_strided_slice %0 {offsets = [1, 0], sizes = [1, 128], strides = [1, 1]} : vector<4x128xf32> to vector<1x128xf32>
    %16 = vector.broadcast %15 : vector<1x128xf32> to vector<256x128xf32>
    %17 = arith.addf %14, %16 : vector<256x128xf32>
    %cst_10 = arith.constant 0.00999999977 : f32
    %18 = vector.broadcast %cst_10 : f32 to vector<256x128xf32>
    %19 = arith.mulf %18, %17 : vector<256x128xf32>
    %20 = arith.maximumf %17, %19 : vector<256x128xf32>
    %21 = arith.truncf %20 : vector<256x128xf32> to vector<256x128xbf16>
    %c1 = arith.constant 1 : index
    %c0_11 = arith.constant 0 : index
    %c0_12 = arith.constant 0 : index
    %22 = vector.load %arg3[%c1, %c0_11, %c0_12] : memref<3x128x128xbf16, #tpu.memory_space<vmem>>, vector<1x128x128xbf16>
    %23 = vector.shape_cast %22 : vector<1x128x128xbf16> to vector<128x128xbf16>
    %cst_13 = arith.constant dense<0.000000e+00> : vector<256x128xf32>
    %24 = tpu.matmul %21, %23, %cst_13 {dimension_numbers = #tpu.dot_dimension_numbers<[1], [0], [0], [1], [0, 0, 1, 1], [], []>} : vector<256x128xbf16>, vector<128x128xbf16>, vector<256x128xf32> -> vector<256x128xf32>
    %25 = vector.extract_strided_slice %0 {offsets = [2, 0], sizes = [1, 128], strides = [1, 1]} : vector<4x128xf32> to vector<1x128xf32>
    %26 = vector.broadcast %25 : vector<1x128xf32> to vector<256x128xf32>
    %27 = arith.addf %24, %26 : vector<256x128xf32>
    %cst_14 = arith.constant 0.00999999977 : f32
    %28 = vector.broadcast %cst_14 : f32 to vector<256x128xf32>
    %29 = arith.mulf %28, %27 : vector<256x128xf32>
    %30 = arith.maximumf %27, %29 : vector<256x128xf32>
    %31 = arith.truncf %30 : vector<256x128xf32> to vector<256x128xbf16>
    %c2 = arith.constant 2 : index
    %c0_15 = arith.constant 0 : index
    %c0_16 = arith.constant 0 : index
    %32 = vector.load %arg3[%c2, %c0_15, %c0_16] : memref<3x128x128xbf16, #tpu.memory_space<vmem>>, vector<1x128x128xbf16>
    %33 = vector.shape_cast %32 : vector<1x128x128xbf16> to vector<128x128xbf16>
    %cst_17 = arith.constant dense<0.000000e+00> : vector<256x128xf32>
    %34 = tpu.matmul %31, %33, %cst_17 {dimension_numbers = #tpu.dot_dimension_numbers<[1], [0], [0], [1], [0, 0, 1, 1], [], []>} : vector<256x128xbf16>, vector<128x128xbf16>, vector<256x128xf32> -> vector<256x128xf32>
    %35 = vector.extract_strided_slice %0 {offsets = [3, 0], sizes = [1, 128], strides = [1, 1]} : vector<4x128xf32> to vector<1x128xf32>
    %36 = vector.broadcast %35 : vector<1x128xf32> to vector<256x128xf32>
    %37 = arith.addf %34, %36 : vector<256x128xf32>
    %c0_18 = arith.constant 0 : index
    %c128 = arith.constant 128 : index
    %38 = vector.load %arg1[%c0_18, %c128] : memref<256x256xf32, #tpu.memory_space<vmem>>, vector<256x128xf32>
    %39 = arith.mulf %37, %38 : vector<256x128xf32>
    %c0_19 = arith.constant 0 : index
    %c0_20 = arith.constant 0 : index
    %40 = vector.load %arg5[%c0_19, %c0_20] : memref<256x128xf32, #tpu.memory_space<vmem>>, vector<256x128xf32>
    tpu.vector_store %arg5[%c0_19, %c0_20], %39 {strides = array<i32>} : memref<256x128xf32, #tpu.memory_space<vmem>>, vector<256x128xf32>,
    return
  }
  func.func @transform_0(%arg0: i32) -> (i32, i32) {
    %c0_i32 = arith.constant 0 : i32
    %c0_i32_0 = arith.constant 0 : i32
    return %arg0, %c0_i32 : i32, i32
  }
  func.func @transform_1(%arg0: i32) -> (i32, i32) {
    %c0_i32 = arith.constant 0 : i32
    %c0_i32_0 = arith.constant 0 : i32
    %c0_i32_1 = arith.constant 0 : i32
    return %c0_i32, %c0_i32_0 : i32, i32
  }
  func.func @transform_2(%arg0: i32) -> (i32, i32, i32) {
    %c0_i32 = arith.constant 0 : i32
    %c0_i32_0 = arith.constant 0 : i32
    %c0_i32_1 = arith.constant 0 : i32
    %c0_i32_2 = arith.constant 0 : i32
    return %c0_i32, %c0_i32_0, %c0_i32_1 : i32, i32, i32
  }
  func.func @transform_3(%arg0: i32) -> (i32, i32) {
    %c0_i32 = arith.constant 0 : i32
    %c0_i32_0 = arith.constant 0 : i32
    %c0_i32_1 = arith.constant 0 : i32
    return %c0_i32, %c0_i32_0 : i32, i32
  }
  func.func @transform_4(%arg0: i32) -> (i32, i32) {
    %c0_i32 = arith.constant 0 : i32
    %c0_i32_0 = arith.constant 0 : i32
    return %arg0, %c0_i32 : i32, i32
  }
}

</mosaic_0001>

<bundles_post_ra>
// kernel: draftnet_forward.1
= control target key start
LH: loop header
LB: loop body
LE: loop exit
PB: predicated region body
PF: predicated region fallthrough
CT: control target
= control target key end

     0   :  { %9 = vsyncpa [#allocation3], 0  ;;  %s2619_s0 = inlined_call_operand.hbm [shape: f32[1024,256], index: 0, kind: input, shape index: {}]   ;;  %s2620_s1 = inlined_call_operand.hbm [shape: bf16[256,128], index: 1, kind: input, shape index: {}]   ;;  %s2621_s2 = inlined_call_operand.hbm [shape: bf16[3,128,128], index: 2, kind: input, shape index: {}]   ;;  %s2622_s3 = inlined_call_operand.hbm [shape: f32[4,128], index: 3, kind: input, shape index: {}]   ;;  %s2623_s4 = inlined_call_operand.hbm [shape: f32[1024,128], index: 4, kind: output, shape index: {}]  }
   0x1   :  { %11 = vsyncpa [#allocation3 + $0x1], 0 }
   0x2   :  { %12 = vsyncpa [#allocation6], 0 }
   0x3   :  { %13 = vsyncpa [#allocation9], 0 }
   0x4   :  { %14 = vsyncpa [#allocation4], 0 }
   0x5   :  { %16 = vsyncpa [#allocation4 + $0x1], 0  ;;  %s2153_s15 = smov 0   ;;  %s2155_s16 = smov 0  }
   0x6   :  { %s2157_s17 = smov 0   ;;  %s2159_s18 = smov 0  }
   0x7 LB: > { %s2174_s19 = sadd.s32 4294967295, %s2117_s18   ;;  %s1559_s20 = sadd.s32 4294967294, %s2117_s18   ;;  %s2117_s18 = sphi %s2159_s18, %s2633_s18   ;;  %s2113_s17 = sphi %s2157_s17, %s2632_s17   ;;  %s2109_s16 = sphi %s2155_s16, %s2631_s16   ;;  %s2105_s15 = sphi %s2153_s15, %s2630_s15  }
   0x8   : > { %p42_p0 = scmp.ne.s32.totalorder %s2109_s16, %s2105_s15  ;;  %p43_p1 = scmp.eq.s32.totalorder %s2174_s19, 0 }
   0x9   : > { %p129_p2 = scmp.eq.s32.totalorder %s2174_s19, 3  ;;  %p135_p3 = scmp.eq.s32.totalorder %s1559_s20, 3 }
   0xa   : > { %p2183_p4 = por %p43_p1, %p42_p0  ;;  %p1560_p5 = scmp.ge.s32.totalorder %s2117_s18, 1 }
   0xb   : > { %p2188_p6 = por %p135_p3, %p42_p0  ;;  %p142_p7 = scmp.lt.s32.totalorder %s2117_s18, 5 }
   0xc   : > { %s153_s25 = sshll.u32 %s2620_s1, 4  ;;  %s2119_s27 = smov [#allocation5]   ;;  %s154_s25 = int_to_ptr.hbm [resolvable:$true] %s153_s25 }
   0xd   : > { %p2196_p8 = pnand %p1560_p5, %p142_p7  ;;  %s155_s28 = sshll.u32 %s2119_s27, 4  ;;  %s156_s28 = int_to_ptr.vmem [resolvable:$true] %s155_s28 }
   0xe   : > { %s167_s6 = sshll.u32 %s2621_s2, 4  ;;  %s2120_s7 = smov 64   ;;  %s168_s6 = int_to_ptr.hbm [resolvable:$true] %s167_s6 }
   0xf   : > { %p1823_p9 = pneg %p2196_p8  ;;  %s2121_s8 = smov 4  }
  0x10   : > { %s2122_s9 = smov [#allocation7]   ;;  %s182_s13 = sshll.u32 %s2622_s3, 4  ;;  %s183_s13 = int_to_ptr.hbm [resolvable:$true] %s182_s13 }
  0x11   : > { %p2204_p10 = pnand %p1823_p9, %p43_p1  ;;  %s169_s10 = sshll.u32 %s2122_s9, 4  ;;  %s170_s10 = int_to_ptr.vmem [resolvable:$true] %s169_s10 }
  0x12   : > { %s2123_s14 = smov [#allocation8]   ;;  %s2219_s23 = sadd.s32 1, %s2117_s18  }
  0x13   : > { %1826 = dma.hbm_to_vmem [thread:$0]  (!%p2204_p10), %s154_s25, 2048, %s156_s28, [#allocation6], %s2120_s7, %s2120_s7, %s2121_s8  }
  0x14   : > { %1829 = dma.hbm_to_vmem [thread:$0]  (!%p2204_p10), %s168_s6, 3072, %s170_s10, [#allocation6], %s2120_s7, %s2120_s7, %s2121_s8  }
  0x15   : > { %s184_s20 = sshll.u32 %s2123_s14, 4  ;;  %s26_s24 = ssub.s32 %s2117_s18, %s2219_s23  ;;  %s185_s20 = int_to_ptr.vmem [resolvable:$true] %s184_s20 }
  0x16   : > { %1832 = dma.hbm_to_vmem [thread:$0]  (!%p2204_p10), %s183_s13, 64, %s185_s20, [#allocation9]  }
  0x17   : > { %s29_s25 = sadd.s32 1, %s2113_s17  ;;  %p27_p11 = scmp.eq.s32.totalorder %s26_s24, 0 }
  0x18   : > { %p36_p12 = scmp.ne.s32.totalorder %s2113_s17, %s2109_s16  ;;  %p37_p13 = scmp.eq.s32.totalorder %s2117_s18, 0 }
  0x19   : > { %p1844_p0 = scmp.lt.s32.totalorder %s2117_s18, 4  ;;  %s195_s30 = sand.u32 1, %s2113_s17  }
  0x1a   : > { %s2231_s27 = scalar_select %p27_p11, %s2113_s17, %s29_s25  }
  0x1b   : > { %p38_p3 = por %p37_p13, %p36_p12  ;;  %p2235_p5 = por %p129_p2, %p36_p12 }
  0x1c   : > { %s1741_s5 = sshll.u32 %s2117_s18, 9  ;;  %s1565_s29 = sshll.u32 %s195_s30, 9 }
  0x1d   : > { %s205_s8 = scalar_lea.hbm %s2619_s0, %s1741_s5  ;;  %s199_s10 = scalar_lea.vmem [#allocation2], %s1565_s29 }
  0x1e   : > { %s206_s9 = sshll.u32 %s205_s8, 4  ;;  %s208_s11 = sshll.u32 %s199_s10, 4  ;;  %s207_s9 = int_to_ptr.hbm [resolvable:$true] %s206_s9  ;;  %s209_s11 = int_to_ptr.vmem [resolvable:$true] %s208_s11 }
  0x1f   : > { %p2246_p7 = pnand %p1844_p0, %p38_p3  ;;  %s196_s13 = scalar_lea.sflag [#allocation3], %s195_s30 }
  0x20   : > { %s2013_s14 = sshra.s32 %s207_s9, 4  ;;  %s2020_s5 = scalar_lea.hbm %s2619_s0, 2048  ;;  %s2014_s14 = int_to_ptr.hbm [resolvable:$true] %s2013_s14 }
  0x21   : > { %s2015_s20 = scalar_lea.hbm %s2014_s14, 512  ;;  %p2017_p9 = pneg %p2246_p7 }
  0x22   : > { %p2016_p2 = scmp.ne.s32.totalorder %s2014_s14, %s2015_s20  ;;  %p2021_p12 = scmp.lt.s32.totalorder %s2014_s14, %s2619_s0 }
  0x23   : > { %p2022_p13 = scmp.lt.s32.totalorder %s2020_s5, %s2015_s20 }
  0x24   : > { %p2018_p10 = pnand %p2017_p9, %p2016_p2 }
  0x25   : > { %p2023_p0 = por %p2022_p13, %p2021_p12 }
  0x26   : > { %p2019_p11 = pneg %p2018_p10 }
  0x28   : > { %p2024_p3 = pnand %p2023_p0, %p2019_p11 }
  0x2a   : > { %2027 = shalt.err (!%p2024_p3)
}
  0x2b   : > { %s2124_s30 = smov 256   ;;  %s2125_s7 = smov 16  }
  0x2c   : > { %1836 = dma.hbm_to_vmem [thread:$0]  (!%p2246_p7), %s207_s9, 8192, %s209_s11, %s196_s13, %s2124_s30, %s2124_s30, %s2125_s7  }
  0x2d   : > { %220 = sbr.rel (%p2196_p8) target bundleno = 971 (0x3cb), region = 36  ;;  %s2263_s8 = sand.u32 (!%p2196_p8), 1, %s2109_s16  }
  0x2e   : > { %s1570_s10 = sshll.u32 (!%p2196_p8), %s2263_s8, 9  ;;  %s223_s14 = scalar_lea.sflag (!%p2196_p8), [#allocation3], %s2263_s8 }
  0x2f   : > { %s2267_s20 = scalar_lea.vmem (!%p2196_p8), [#allocation2], %s1570_s10 }
  0x32   : > { %2088 = dma.done.wait (%p2183_p4), %s223_s14, 8192  }
  0x33   : > { %2090 = vsyncadd (%p2183_p4), %s223_s14, 4294959104 }
  0x34   : > { %2092 = dma.done.wait (%p43_p1), [#allocation6], 5120  }
  0x35   : > { %2094 = vsyncadd (%p43_p1), [#allocation6], 4294962176 }
  0x36   : > { %2096 = dma.done.wait (%p43_p1), [#allocation9], 64  }
  0x37   : > { %2098 = vsyncadd (%p43_p1), [#allocation9], 4294967232  ;;  %v1749_v0 = vld [vmem:[#allocation5 + $0x38] sm:$0xff]  ;;  %v1748_v1 = vld [vmem:[#allocation5 + $0x30] sm:$0xff]  ;;  %s1574_s21 = sshll.u32 %s2263_s8, 8  ;;  %s1782_s9 = sshll.u32 %s2174_s19, 8 }
  0x38   : > { %1783 = vmatpush.bf16.msra.mxu1 %v1749_v0  ;;  %495 = vmatpush.bf16.msra.mxu0 %v1749_v0  ;;  %v1747_v2 = vld [vmem:[#allocation5 + $0x28] sm:$0xff]  ;;  %v1746_v3 = vld [vmem:[#allocation5 + $0x20] sm:$0xff]  ;;  %v1745_v4 = vld [vmem:[#allocation5 + $0x18] sm:$0xff]  ;;  %s2476_s26 = scalar_lea.vmem [#allocation10], %s1574_s21  ;;  %s1453_s13 = scalar_lea.hbm %s2623_s4, %s1782_s9 }
  0x39   : > { %1784 = vmatpush.bf16.msra.mxu2 %v1749_v0  ;;  %1785 = vmatpush.bf16.msra.mxu3 %v1749_v0  ;;  %v1744_v5 = vld [vmem:[#allocation5 + $0x10] sm:$0xff]  ;;  %v1743_v6 = vld [vmem:[#allocation5 + $0x8] sm:$0xff]  ;;  %v1742_v7 = vld [vmem:[#allocation5] sm:$0xff]  ;;  %s1454_s24 = sshll.u32 %s2476_s26, 4  ;;  %s1456_s25 = sshll.u32 %s1453_s13, 4  ;;  %s1455_s24 = int_to_ptr.vmem [resolvable:$true] %s1454_s24  ;;  %s1457_s25 = int_to_ptr.hbm [resolvable:$true] %s1456_s25 }
  0x3a   : > { %v286_v8 = vld [vmem:[%s2267_s20 + $0x80] sm:$0xff]  ;;  %v288_v9 = vld [vmem:[%s2267_s20 + $0x90] sm:$0xff]  ;;  %v1757_v10 = vld [vmem:[#allocation5 + $0x78] sm:$0xff]  ;;  %s1442_s5 = scalar_lea.sflag [#allocation4], %s2263_s8  ;;  %s2057_s19 = sshra.s32 %s1457_s25, 4  ;;  %s2058_s19 = int_to_ptr.hbm [resolvable:$true] %s2057_s19 }
  0x3b   : > { %v342_v11 = vpack.c.bf16 %v288_v9, %v286_v8  ;;  %v1756_v12 = vld [vmem:[#allocation5 + $0x70] sm:$0xff]  ;;  %v1755_v13 = vld [vmem:[#allocation5 + $0x68] sm:$0xff]  ;;  %v1754_v14 = vld [vmem:[#allocation5 + $0x60] sm:$0xff]  ;;  %s2059_s29 = scalar_lea.hbm %s2058_s19, 256  ;;  %s2063_s7 = scalar_lea.hbm %s2623_s4, 1024 }
  0x3c   : > { %1786 = vmatpush.bf16.msra.mxu1 %v1748_v1  ;;  %496 = vmatpush.bf16.msra.mxu0 %v1748_v1  ;;  %v290_v15 = vld [vmem:[%s2267_s20 + $0xa0] sm:$0xff]  ;;  %v292_v16 = vld [vmem:[%s2267_s20 + $0xb0] sm:$0xff]  ;;  %v1753_v17 = vld [vmem:[#allocation5 + $0x58] sm:$0xff]  ;;  %p2060_p1 = scmp.ne.s32.totalorder %s2058_s19, %s2059_s29  ;;  %p2064_p7 = scmp.lt.s32.totalorder %s2058_s19, %s2623_s4 }
  0x3d   : > { %1787 = vmatpush.bf16.msra.mxu2 %v1748_v1  ;;  %1788 = vmatpush.bf16.msra.mxu3 %v1748_v1  ;;  %v344_v18 = vpack.c.bf16 %v292_v16, %v290_v15  ;;  %v1752_v19 = vld [vmem:[#allocation5 + $0x50] sm:$0xff]  ;;  %v270_v20 = vld [vmem:[%s2267_s20] sm:$0xff]  ;;  %v1751_v23 = vld [vmem:[#allocation5 + $0x48] sm:$0xff]  ;;  %p2065_p2 = scmp.lt.s32.totalorder %s2063_s7, %s2059_s29 }
  0x3e   : > { %v272_v21 = vld [vmem:[%s2267_s20 + $0x10] sm:$0xff]  ;;  %v1750_v24 = vld [vmem:[#allocation5 + $0x40] sm:$0xff]  ;;  %v271_v37 = vld [vmem:[%s2267_s20 + $0x8] sm:$0xff]  ;;  %p2061_p4 = pnand %p2060_p1, %p2235_p5 }
  0x3f   : > { %v334_v22 = vpack.c.bf16 %v272_v21, %v270_v20  ;;  %v294_v25 = vld [vmem:[%s2267_s20 + $0xc0] sm:$0xff]  ;;  %v296_v26 = vld [vmem:[%s2267_s20 + $0xd0] sm:$0xff]  ;;  %v273_v38 = vld [vmem:[%s2267_s20 + $0x18] sm:$0xff]  ;;  %p2066_p9 = por %p2065_p2, %p2064_p7 }
  0x40   : > { %1789 = vmatpush.bf16.msra.mxu1 %v1747_v2  ;;  %497 = vmatpush.bf16.msra.mxu0 %v1747_v2  ;;  %v346_v27 = vpack.c.bf16 %v296_v26, %v294_v25  ;;  %v274_v28 = vld [vmem:[%s2267_s20 + $0x20] sm:$0xff]  ;;  %v276_v29 = vld [vmem:[%s2267_s20 + $0x30] sm:$0xff]  ;;  %v335_v39 = vpack.c.bf16 %v273_v38, %v271_v37  ;;  %v275_v43 = vld [vmem:[%s2267_s20 + $0x28] sm:$0xff]  ;;  %p2062_p8 = pneg %p2061_p4 }
  0x41   : > { %1790 = vmatpush.bf16.msra.mxu2 %v1747_v2  ;;  %1791 = vmatpush.bf16.msra.mxu3 %v1747_v2  ;;  %v336_v30 = vpack.c.bf16 %v276_v29, %v274_v28  ;;  %v298_v31 = vld [vmem:[%s2267_s20 + $0xe0] sm:$0xff]  ;;  %v300_v32 = vld [vmem:[%s2267_s20 + $0xf0] sm:$0xff]  ;;  %v277_v44 = vld [vmem:[%s2267_s20 + $0x38] sm:$0xff] }
  0x42   : > { %v348_v33 = vpack.c.bf16 %v300_v32, %v298_v31  ;;  %v278_v34 = vld [vmem:[%s2267_s20 + $0x40] sm:$0xff]  ;;  %v280_v35 = vld [vmem:[%s2267_s20 + $0x50] sm:$0xff]  ;;  %v337_v45 = vpack.c.bf16 %v277_v44, %v275_v43  ;;  %v279_v46 = vld [vmem:[%s2267_s20 + $0x48] sm:$0xff]  ;;  %p2067_p10 = pnand %p2066_p9, %p2062_p8 }
  0x43   : > { %v338_v36 = vpack.c.bf16 %v280_v35, %v278_v34  ;;  %v282_v40 = vld [vmem:[%s2267_s20 + $0x60] sm:$0xff]  ;;  %v284_v41 = vld [vmem:[%s2267_s20 + $0x70] sm:$0xff]  ;;  %v281_v47 = vld [vmem:[%s2267_s20 + $0x58] sm:$0xff] }
  0x44   : > { %1792 = vmatpush.bf16.msra.mxu1 %v1746_v3  ;;  %498 = vmatpush.bf16.msra.mxu0 %v1746_v3  ;;  %v340_v42 = vpack.c.bf16 %v284_v41, %v282_v40  ;;  %v339_v48 = vpack.c.bf16 %v281_v47, %v279_v46  ;;  %v302_v49 = vld [vmem:[%s2267_s20 + $0x100] sm:$0xff]  ;;  %v304_v50 = vld [vmem:[%s2267_s20 + $0x110] sm:$0xff]  ;;  %v283_v52 = vld [vmem:[%s2267_s20 + $0x68] sm:$0xff] }
  0x45   : > { %1793 = vmatpush.bf16.msra.mxu2 %v1746_v3  ;;  %1794 = vmatpush.bf16.msra.mxu3 %v1746_v3  ;;  %v350_v51 = vpack.c.bf16 %v304_v50, %v302_v49  ;;  %v285_v53 = vld [vmem:[%s2267_s20 + $0x78] sm:$0xff]  ;;  %v306_v56 = vld [vmem:[%s2267_s20 + $0x120] sm:$0xff]  ;;  %v308_v57 = vld [vmem:[%s2267_s20 + $0x130] sm:$0xff] }
  0x46   : > { %v341_v54 = vpack.c.bf16 %v285_v53, %v283_v52  ;;  %v1765_v55 = vld [vmem:[#allocation7 + $0x38] sm:$0xff]  ;;  %v352_v58 = vpack.c.bf16 %v308_v57, %v306_v56  ;;  %v1764_v59 = vld [vmem:[#allocation7 + $0x30] sm:$0xff]  ;;  %v287_v60 = vld [vmem:[%s2267_s20 + $0x88] sm:$0xff] }
  0x47   : > { %v289_v61 = vld [vmem:[%s2267_s20 + $0x98] sm:$0xff]  ;;  %v1763_v0 = vld [vmem:[#allocation7 + $0x28] sm:$0xff]  ;;  %v310_v1 = vld [vmem:[%s2267_s20 + $0x140] sm:$0xff] }
  0x48   : > { %1795 = vmatpush.bf16.msra.mxu1 %v1745_v4  ;;  %499 = vmatpush.bf16.msra.mxu0 %v1745_v4  ;;  %v343_v62 = vpack.c.bf16 %v289_v61, %v287_v60  ;;  %v312_v2 = vld [vmem:[%s2267_s20 + $0x150] sm:$0xff]  ;;  %v295_v16 = vld [vmem:[%s2267_s20 + $0xc8] sm:$0xff]  ;;  %v305_v32 = vld [vmem:[%s2267_s20 + $0x118] sm:$0xff] }
  0x49   : > { %1796 = vmatpush.bf16.msra.mxu2 %v1745_v4  ;;  %1797 = vmatpush.bf16.msra.mxu3 %v1745_v4  ;;  %v354_v3 = vpack.c.bf16 %v312_v2, %v310_v1  ;;  %v1760_v15 = vld [vmem:[#allocation7 + $0x10] sm:$0xff]  ;;  %v1759_v20 = vld [vmem:[#allocation7 + $0x8] sm:$0xff]  ;;  %v309_v46 = vld [vmem:[%s2267_s20 + $0x138] sm:$0xff] }
  0x4a   : > { %v303_v31 = vld [vmem:[%s2267_s20 + $0x108] sm:$0xff]  ;;  %v318_v52 = vld [vmem:[%s2267_s20 + $0x180] sm:$0xff]  ;;  %v320_v53 = vld [vmem:[%s2267_s20 + $0x190] sm:$0xff] }
  0x4b   : > { %v351_v34 = vpack.c.bf16 %v305_v32, %v303_v31  ;;  %v313_v1 = vld [vmem:[%s2267_s20 + $0x158] sm:$0xff] }
  0x4c   : > { %1798 = vmatpush.bf16.msra.mxu1 %v1744_v5  ;;  %500 = vmatpush.bf16.msra.mxu0 %v1744_v5 }
  0x4d   : > { %1799 = vmatpush.bf16.msra.mxu2 %v1744_v5  ;;  %1800 = vmatpush.bf16.msra.mxu3 %v1744_v5  ;;  %v1762_v5 = vld [vmem:[#allocation7 + $0x20] sm:$0xff] }
  0x50   : > { %1801 = vmatpush.bf16.msra.mxu1 %v1743_v6  ;;  %501 = vmatpush.bf16.msra.mxu0 %v1743_v6 }
  0x51   : > { %1802 = vmatpush.bf16.msra.mxu2 %v1743_v6  ;;  %1803 = vmatpush.bf16.msra.mxu3 %v1743_v6  ;;  %v291_v6 = vld [vmem:[%s2267_s20 + $0xa8] sm:$0xff] }
  0x54   : > { %1804 = vmatpush.bf16.msra.mxu1 %v1742_v7  ;;  %502 = vmatpush.bf16.msra.mxu0 %v1742_v7 }
  0x55   : > { %1805 = vmatpush.bf16.msra.mxu2 %v1742_v7  ;;  %1806 = vmatpush.bf16.msra.mxu3 %v1742_v7  ;;  %v293_v7 = vld [vmem:[%s2267_s20 + $0xb8] sm:$0xff] }
  0x56   : > { %v345_v8 = vpack.c.bf16 %v293_v7, %v291_v6 }
  0x57   : > { %523 = vmatmul.bf16.vlgmr.msra.gmra.mxu1 %v342_v11  ;;  %503 = vmatmul.bf16.vlgmr.msra.gmra.mxu0 %v334_v22  ;;  %v314_v11 = vld [vmem:[%s2267_s20 + $0x160] sm:$0xff]  ;;  %v299_v22 = vld [vmem:[%s2267_s20 + $0xe8] sm:$0xff] }
  0x58   : > { %584 = vmatpush.bf16.msrb.mxu1 %v1757_v10  ;;  %543 = vmatmul.bf16.vlgmr.msra.gmra.mxu2 %v350_v51  ;;  %v1761_v10 = vld [vmem:[#allocation7 + $0x18] sm:$0xff] }
  0x59   : > { %818 = vmatpush.bf16.msrb.mxu2 %v1765_v55  ;;  %v358_v55 = vpack.c.bf16 %v320_v53, %v318_v52  ;;  %v330_v53 = vld [vmem:[%s2267_s20 + $0x1e0] sm:$0xff] }
  0x5b   : > { %563 = vmatmul.bf16.vlgmr.msra.gmra.mxu3 %v358_v55 }
  0x5c   : > { %585 = vmatpush.bf16.msrb.mxu1 %v1756_v12  ;;  %v316_v12 = vld [vmem:[%s2267_s20 + $0x170] sm:$0xff] }
  0x5d   : > { %819 = vmatpush.bf16.msrb.mxu2 %v1764_v59 }
  0x60   : > { %586 = vmatpush.bf16.msrb.mxu1 %v1755_v13  ;;  %v356_v13 = vpack.c.bf16 %v316_v12, %v314_v11  ;;  %v324_v11 = vld [vmem:[%s2267_s20 + $0x1b0] sm:$0xff] }
  0x61   : > { %820 = vmatpush.bf16.msrb.mxu2 %v1763_v0  ;;  %v311_v0 = vld [vmem:[%s2267_s20 + $0x148] sm:$0xff] }
  0x62   : > { %v355_v6 = vpack.c.bf16 %v313_v1, %v311_v0 }
  0x64   : > { %587 = vmatpush.bf16.msrb.mxu1 %v1754_v14 }
  0x65   : > { %821 = vmatpush.bf16.msrb.mxu2 %v1762_v5 }
  0x67   : > { %528 = vmatmul.bf16.gmra.mxu1 %v344_v18  ;;  %508 = vmatmul.bf16.gmra.mxu0 %v336_v30  ;;  %v2337_v30 = vld [vmem:[#allocation8] sm:$0xf] }
  0x68   : > { %588 = vmatpush.bf16.msrb.mxu1 %v1753_v17  ;;  %548 = vmatmul.bf16.gmra.mxu2 %v352_v58  ;;  %v297_v17 = vld [vmem:[%s2267_s20 + $0xd8] sm:$0xff] }
  0x69   : > { %822 = vmatpush.bf16.msrb.mxu2 %v1761_v10  ;;  %v347_v18 = vpack.c.bf16 %v297_v17, %v295_v16  ;;  %v322_v10 = vld [vmem:[%s2267_s20 + $0x1a0] sm:$0xff] }
  0x6c   : > { %589 = vmatpush.bf16.msrb.mxu1 %v1752_v19 }
  0x6d   : > { %823 = vmatpush.bf16.msrb.mxu2 %v1760_v15 }
  0x70   : > { %590 = vmatpush.bf16.msrb.mxu1 %v1751_v23  ;;  %v301_v23 = vld [vmem:[%s2267_s20 + $0xf8] sm:$0xff] }
  0x71   : > { %824 = vmatpush.bf16.msrb.mxu2 %v1759_v20  ;;  %v349_v26 = vpack.c.bf16 %v301_v23, %v299_v22 }
  0x74   : > { %591 = vmatpush.bf16.msrb.mxu1 %v1750_v24  ;;  %v1758_v24 = vld [vmem:[#allocation7] sm:$0xff] }
  0x75   : > { %825 = vmatpush.bf16.msrb.mxu2 %v1758_v24  ;;  %v315_v24 = vld [vmem:[%s2267_s20 + $0x168] sm:$0xff] }
  0x77   : > { %533 = vmatmul.bf16.gmra.mxu1 %v346_v27  ;;  %513 = vmatmul.bf16.gmra.mxu0 %v338_v36 }
  0x78   : > { %553 = vmatmul.bf16.gmra.mxu2 %v354_v3 }
  0x87   : > { %538 = vmatmul.bf16.gmra.mxu1 %v348_v33  ;;  %518 = vmatmul.bf16.gmra.mxu0 %v340_v42  ;;  %v2342_v33 = vperm.slane %v2337_v30, 0 }
  0x88   : > { %558 = vmatmul.bf16.gmra.mxu2 %v356_v13  ;;  %v360_v13 = vpack.c.bf16 %v324_v11, %v322_v10 }
  0x8a   : > { %568 = vmatmul.bf16.gmra.mxu3 %v360_v13  ;;  %v1771_v13 = vld [vmem:[#allocation7 + $0x68] sm:$0xff] }
  0x97   : > { %592 = vmatmul.bf16.vlgmr.msrb.gmra.mxu1 %v335_v39 }
  0xa7   : > { %597 = vmatmul.bf16.gmra.mxu1 %v337_v45  ;;  %v307_v45 = vld [vmem:[%s2267_s20 + $0x128] sm:$0xff] }
  0xa8   : > { %v353_v50 = vpack.c.bf16 %v309_v46, %v307_v45  ;;  %v319_v46 = vld [vmem:[%s2267_s20 + $0x188] sm:$0xff] }
  0xb7   : > { %602 = vmatmul.bf16.gmra.mxu1 %v339_v48 }
  0xc7   : > { %607 = vmatmul.bf16.gmra.mxu1 %v341_v54 }
  0xd4   : > { %v2311_v63 = vpop.f32.mrf.mxu1  ;;  %v504_v25 = vpop.f32.mrf.mxu0 }
  0xd5   : > { %v505_v36 = vadd.f32 %v504_v25, %v2342_v33  ;;  %v317_v25 = vld [vmem:[%s2267_s20 + $0x178] sm:$0xff] }
  0xd6   : > { %v357_v32 = vpack.c.bf16 %v317_v25, %v315_v24  ;;  %v329_v24 = vld [vmem:[%s2267_s20 + $0x1d8] sm:$0xff] }
  0xd7   : > { %612 = vmatmul.bf16.gmra.mxu1 %v343_v62 }
  0xdc   : > { %v2315_v4 = vpop.f32.mrf.mxu1  ;;  %v506_v29 = vpop.f32.mrf.mxu0 }
  0xdd   : > { %v507_v39 = vadd.f32 %v506_v29, %v2342_v33 }
  0xe4   : > { %v2319_v9 = vpop.f32.mrf.mxu1  ;;  %v509_v37 = vpop.f32.mrf.mxu0 }
  0xe5   : > { %v510_v54 = vadd.f32 %v509_v37, %v2342_v33 }
  0xe7   : > { %617 = vmatmul.bf16.gmra.mxu1 %v345_v8 }
  0xec   : > { %v2323_v14 = vpop.f32.mrf.mxu1  ;;  %v511_v44 = vpop.f32.mrf.mxu0 }
  0xed   : > { %v512_v58 = vadd.f32 %v511_v44, %v2342_v33 }
  0xf4   : > { %v2327_v19 = vpop.f32.mrf.mxu1  ;;  %v514_v57 = vpop.f32.mrf.mxu0 }
  0xf5   : > { %v515_v12 = vadd.f32 %v514_v57, %v2342_v33 }
  0xf7   : > { %622 = vmatmul.bf16.gmra.mxu1 %v347_v18 }
  0xfc   : > { %v2329_v21 = vpop.f32.mrf.mxu1  ;;  %v516_v7 = vpop.f32.mrf.mxu0 }
  0xfd   : > { %v517_v16 = vadd.f32 %v516_v7, %v2342_v33  ;;  %v1772_v7 = vld [vmem:[#allocation7 + $0x70] sm:$0xff] }
 0x104   : > { %v2333_v27 = vpop.f32.mrf.mxu1  ;;  %v519_v22 = vpop.f32.mrf.mxu0 }
 0x105   : > { %v520_v37 = vadd.f32 %v519_v22, %v2342_v33 }
 0x107   : > { %627 = vmatmul.bf16.gmra.mxu1 %v349_v26 }
 0x10c   : > { %v2335_v28 = vpop.f32.mrf.mxu1 }
 0x114   : > { %v593_v35 = vpop.f32.mrf.mxu1 }
 0x115   : > { %v594_v38 = vadd.f32 %v593_v35, %v505_v36  ;;  %v326_v35 = vld [vmem:[%s2267_s20 + $0x1c0] sm:$0xff]  ;;  %v328_v36 = vld [vmem:[%s2267_s20 + $0x1d0] sm:$0xff] }
 0x117   : > { %632 = vmatmul.bf16.gmra.mxu1 %v351_v34  ;;  %v673_v41 = vmul.f32 0.01, %v594_v38 }
 0x119   : > { %v705_v47 = vmax.f32 %v594_v38, %v673_v41  ;;  %v362_v38 = vpack.c.bf16 %v328_v36, %v326_v35  ;;  %v1769_v36 = vld [vmem:[#allocation7 + $0x58] sm:$0xff] }
 0x11b   : > { %573 = vmatmul.bf16.gmra.mxu3 %v362_v38 }
 0x11c   : > { %v595_v40 = vpop.f32.mrf.mxu1 }
 0x11d   : > { %v596_v42 = vadd.f32 %v595_v40, %v507_v39  ;;  %v521_v39 = vpop.f32.mrf.mxu0 }
 0x11e   : > { %v522_v41 = vadd.f32 %v521_v39, %v2342_v33 }
 0x11f   : > { %v674_v43 = vmul.f32 0.01, %v596_v42 }
 0x121   : > { %v706_v48 = vmax.f32 %v596_v42, %v674_v43 }
 0x123   : > { %v737_v49 = vpack.c.bf16 %v706_v48, %v705_v47  ;;  %v321_v47 = vld [vmem:[%s2267_s20 + $0x198] sm:$0xff] }
 0x124   : > { %v598_v51 = vpop.f32.mrf.mxu1 }
 0x125   : > { %826 = vmatmul.bf16.vlgmr.msrb.gmra.mxu2 %v737_v49  ;;  %v599_v56 = vadd.f32 %v598_v51, %v510_v54  ;;  %v359_v51 = vpack.c.bf16 %v321_v47, %v319_v46  ;;  %v332_v54 = vld [vmem:[%s2267_s20 + $0x1f0] sm:$0xff] }
 0x126   : > { %v364_v55 = vpack.c.bf16 %v332_v54, %v330_v53  ;;  %v1768_v46 = vld [vmem:[#allocation7 + $0x50] sm:$0xff] }
 0x127   : > { %637 = vmatmul.bf16.gmra.mxu1 %v353_v50  ;;  %v675_v60 = vmul.f32 0.01, %v599_v56 }
 0x129   : > { %v707_v2 = vmax.f32 %v599_v56, %v675_v60  ;;  %v525_v56 = vadd.f32 %v2311_v63, %v2342_v33  ;;  %v527_v60 = vadd.f32 %v2315_v4, %v2342_v33  ;;  %v530_v4 = vadd.f32 %v2319_v9, %v2342_v33 }
 0x12b   : > { %578 = vmatmul.bf16.gmra.mxu3 %v364_v55 }
 0x12c   : > { %v600_v59 = vpop.f32.mrf.mxu1 }
 0x12d   : > { %v601_v61 = vadd.f32 %v600_v59, %v512_v58  ;;  %v1773_v58 = vld [vmem:[#allocation7 + $0x78] sm:$0xff]  ;;  %v2370_v59 = vpop.f32.mrf.mxu2 }
 0x12e   : > { %1053 = vmatpush.bf16.msrb.mxu3 %v1773_v58 }
 0x12f   : > { %v676_v62 = vmul.f32 0.01, %v601_v61 }
 0x131   : > { %v708_v3 = vmax.f32 %v601_v61, %v676_v62 }
 0x132   : > { %1054 = vmatpush.bf16.msrb.mxu3 %v1772_v7 }
 0x133   : > { %v738_v5 = vpack.c.bf16 %v708_v3, %v707_v2  ;;  %v323_v2 = vld [vmem:[%s2267_s20 + $0x1a8] sm:$0xff]  ;;  %v325_v3 = vld [vmem:[%s2267_s20 + $0x1b8] sm:$0xff] }
 0x134   : > { %v603_v8 = vpop.f32.mrf.mxu1 }
 0x135   : > { %831 = vmatmul.bf16.gmra.mxu2 %v738_v5  ;;  %v604_v15 = vadd.f32 %v603_v8, %v515_v12  ;;  %v361_v8 = vpack.c.bf16 %v325_v3, %v323_v2  ;;  %v2376_v11 = vpop.f32.mrf.mxu2 }
 0x136   : > { %1055 = vmatpush.bf16.msrb.mxu3 %v1771_v13 }
 0x137   : > { %642 = vmatmul.bf16.gmra.mxu1 %v355_v6  ;;  %v677_v18 = vmul.f32 0.01, %v604_v15 }
 0x139   : > { %v709_v26 = vmax.f32 %v604_v15, %v677_v18  ;;  %v532_v15 = vadd.f32 %v2323_v14, %v2342_v33  ;;  %v535_v14 = vadd.f32 %v2327_v19, %v2342_v33 }
 0x13c   : > { %v605_v17 = vpop.f32.mrf.mxu1 }
 0x13d   : > { %v606_v20 = vadd.f32 %v605_v17, %v517_v16 }
 0x13f   : > { %v678_v23 = vmul.f32 0.01, %v606_v20 }
 0x141   : > { %v710_v29 = vmax.f32 %v606_v20, %v678_v23  ;;  %v2382_v20 = vpop.f32.mrf.mxu2  ;;  %v327_v23 = vld [vmem:[%s2267_s20 + $0x1c8] sm:$0xff] }
 0x142   : > { %v363_v9 = vpack.c.bf16 %v329_v24, %v327_v23  ;;  %v550_v13 = vadd.f32 %v2382_v20, %v2342_v33 }
 0x143   : > { %v739_v31 = vpack.c.bf16 %v710_v29, %v709_v26  ;;  %v1770_v29 = vld [vmem:[#allocation7 + $0x60] sm:$0xff] }
 0x144   : > { %v608_v34 = vpop.f32.mrf.mxu1  ;;  %1056 = vmatpush.bf16.msrb.mxu3 %v1770_v29 }
 0x145   : > { %836 = vmatmul.bf16.gmra.mxu2 %v739_v31  ;;  %v609_v40 = vadd.f32 %v608_v34, %v520_v37  ;;  %v537_v37 = vadd.f32 %v2329_v21, %v2342_v33 }
 0x147   : > { %647 = vmatmul.bf16.gmra.mxu1 %v357_v32  ;;  %v679_v43 = vmul.f32 0.01, %v609_v40 }
 0x148   : > { %1057 = vmatpush.bf16.msrb.mxu3 %v1769_v36 }
 0x149   : > { %v711_v48 = vmax.f32 %v609_v40, %v679_v43  ;;  %v551_v34 = vpop.f32.mrf.mxu2  ;;  %v333_v43 = vld [vmem:[%s2267_s20 + $0x1f8] sm:$0xff] }
 0x14c   : > { %v610_v42 = vpop.f32.mrf.mxu1  ;;  %1058 = vmatpush.bf16.msrb.mxu3 %v1768_v46 }
 0x14d   : > { %v611_v44 = vadd.f32 %v610_v42, %v522_v41  ;;  %v331_v42 = vld [vmem:[%s2267_s20 + $0x1e8] sm:$0xff] }
 0x14e   : > { %v365_v19 = vpack.c.bf16 %v333_v43, %v331_v42 }
 0x14f   : > { %v680_v45 = vmul.f32 0.01, %v611_v44 }
 0x151   : > { %v712_v49 = vmax.f32 %v611_v44, %v680_v45  ;;  %v554_v47 = vpop.f32.mrf.mxu2 }
 0x153   : > { %v740_v50 = vpack.c.bf16 %v712_v49, %v711_v48 }
 0x154   : > { %v613_v52 = vpop.f32.mrf.mxu1 }
 0x155   : > { %841 = vmatmul.bf16.gmra.mxu2 %v740_v50  ;;  %v614_v57 = vadd.f32 %v613_v52, %v525_v56  ;;  %v540_v50 = vadd.f32 %v2333_v27, %v2342_v33  ;;  %v1767_v56 = vld [vmem:[#allocation7 + $0x48] sm:$0xff]  ;;  %v545_v27 = vadd.f32 %v2370_v59, %v2342_v33  ;;  %v2403_v59 = vperm.slane %v2337_v30, 1 }
 0x156   : > { %1059 = vmatpush.bf16.msrb.mxu3 %v1767_v56 }
 0x157   : > { %652 = vmatmul.bf16.gmra.mxu1 %v359_v51  ;;  %v681_v62 = vmul.f32 0.01, %v614_v57  ;;  %v542_v51 = vadd.f32 %v2335_v28, %v2342_v33  ;;  %v547_v28 = vadd.f32 %v2376_v11, %v2342_v33  ;;  %v552_v11 = vadd.f32 %v551_v34, %v2342_v33 }
 0x158   : > { %v555_v34 = vadd.f32 %v554_v47, %v2342_v33 }
 0x159   : > { %v713_v5 = vmax.f32 %v614_v57, %v681_v62  ;;  %v556_v52 = vpop.f32.mrf.mxu2 }
 0x15c   : > { %v615_v61 = vpop.f32.mrf.mxu1 }
 0x15d   : > { %v616_v0 = vadd.f32 %v615_v61, %v527_v60 }
 0x15f   : > { %v682_v1 = vmul.f32 0.01, %v616_v0 }
 0x161   : > { %v714_v6 = vmax.f32 %v616_v0, %v682_v1  ;;  %v1766_v0 = vld [vmem:[#allocation7 + $0x40] sm:$0xff]  ;;  %v559_v1 = vpop.f32.mrf.mxu2 }
 0x162   : > { %1060 = vmatpush.bf16.msrb.mxu3 %v1766_v0 }
 0x163   : > { %v741_v63 = vpack.c.bf16 %v714_v6, %v713_v5 }
 0x164   : > { %v618_v10 = vpop.f32.mrf.mxu1 }
 0x165   : > { %846 = vmatmul.bf16.gmra.mxu2 %v741_v63  ;;  %v619_v12 = vadd.f32 %v618_v10, %v530_v4 }
 0x167   : > { %657 = vmatmul.bf16.gmra.mxu1 %v361_v8  ;;  %v683_v17 = vmul.f32 0.01, %v619_v12 }
 0x169   : > { %v715_v25 = vmax.f32 %v619_v12, %v683_v17  ;;  %v561_v63 = vpop.f32.mrf.mxu2 }
 0x16c   : > { %v620_v16 = vpop.f32.mrf.mxu1 }
 0x16d   : > { %v621_v18 = vadd.f32 %v620_v16, %v532_v15 }
 0x16f   : > { %v684_v22 = vmul.f32 0.01, %v621_v18 }
 0x171   : > { %v716_v26 = vmax.f32 %v621_v18, %v684_v22 }
 0x173   : > { %v742_v31 = vpack.c.bf16 %v716_v26, %v715_v25 }
 0x174   : > { %v623_v32 = vpop.f32.mrf.mxu1 }
 0x175   : > { %851 = vmatmul.bf16.gmra.mxu2 %v742_v31  ;;  %v624_v35 = vadd.f32 %v623_v32, %v535_v14 }
 0x177   : > { %662 = vmatmul.bf16.gmra.mxu1 %v363_v9  ;;  %v685_v39 = vmul.f32 0.01, %v624_v35 }
 0x179   : > { %v717_v44 = vmax.f32 %v624_v35, %v685_v39 }
 0x17c   : > { %v625_v38 = vpop.f32.mrf.mxu1 }
 0x17d   : > { %v626_v40 = vadd.f32 %v625_v38, %v537_v37 }
 0x17f   : > { %v686_v41 = vmul.f32 0.01, %v626_v40 }
 0x181   : > { %v718_v45 = vmax.f32 %v626_v40, %v686_v41  ;;  %v557_v40 = vadd.f32 %v556_v52, %v2342_v33  ;;  %v560_v52 = vadd.f32 %v559_v1, %v2342_v33 }
 0x183   : > { %v743_v48 = vpack.c.bf16 %v718_v45, %v717_v44 }
 0x184   : > { %v628_v49 = vpop.f32.mrf.mxu1 }
 0x185   : > { %856 = vmatmul.bf16.gmra.mxu2 %v743_v48  ;;  %v629_v21 = vadd.f32 %v628_v49, %v540_v50 }
 0x187   : > { %667 = vmatmul.bf16.gmra.mxu1 %v365_v19  ;;  %v687_v54 = vmul.f32 0.01, %v629_v21 }
 0x189   : > { %v719_v58 = vmax.f32 %v629_v21, %v687_v54  ;;  %v564_v21 = vpop.f32.mrf.mxu3 }
 0x18c   : > { %v630_v53 = vpop.f32.mrf.mxu1 }
 0x18d   : > { %v631_v55 = vadd.f32 %v630_v53, %v542_v51 }
 0x18f   : > { %v688_v57 = vmul.f32 0.01, %v631_v55 }
 0x191   : > { %v720_v60 = vmax.f32 %v631_v55, %v688_v57 }
 0x193   : > { %v744_v61 = vpack.c.bf16 %v720_v60, %v719_v58  ;;  %v562_v60 = vadd.f32 %v561_v63, %v2342_v33 }
 0x194   : > { %v633_v62 = vpop.f32.mrf.mxu1 }
 0x195   : > { %861 = vmatmul.bf16.gmra.mxu2 %v744_v61  ;;  %v634_v2 = vadd.f32 %v633_v62, %v545_v27  ;;  %v566_v62 = vpop.f32.mrf.mxu3 }
 0x197   : > { %v689_v5 = vmul.f32 0.01, %v634_v2 }
 0x199   : > { %v721_v8 = vmax.f32 %v634_v2, %v689_v5 }
 0x19c   : > { %v635_v3 = vpop.f32.mrf.mxu1 }
 0x19d   : > { %v636_v6 = vadd.f32 %v635_v3, %v547_v28 }
 0x19f   : > { %v690_v7 = vmul.f32 0.01, %v636_v6 }
 0x1a1   : > { %v722_v10 = vmax.f32 %v636_v6, %v690_v7 }
 0x1a3   : > { %v745_v4 = vpack.c.bf16 %v722_v10, %v721_v8 }
 0x1a4   : > { %v638_v12 = vpop.f32.mrf.mxu1 }
 0x1a5   : > { %866 = vmatmul.bf16.gmra.mxu2 %v745_v4  ;;  %v639_v16 = vadd.f32 %v638_v12, %v550_v13  ;;  %v565_v13 = vadd.f32 %v564_v21, %v2342_v33 }
 0x1a7   : > { %v691_v18 = vmul.f32 0.01, %v639_v16 }
 0x1a8   : > { %v827_v15 = vpop.f32.mrf.mxu2 }
 0x1a9   : > { %v828_v22 = vadd.f32 %v827_v15, %v2403_v59  ;;  %v723_v26 = vmax.f32 %v639_v16, %v691_v18  ;;  %v569_v15 = vpop.f32.mrf.mxu3  ;;  %v567_v18 = vadd.f32 %v566_v62, %v2342_v33  ;;  %v1780_v62 = vld [vmem:[#allocation7 + $0xb0] sm:$0xff] }
 0x1ab   : > { %v907_v29 = vmul.f32 0.01, %v828_v22 }
 0x1ac   : > { %v640_v17 = vpop.f32.mrf.mxu1 }
 0x1ad   : > { %v641_v23 = vadd.f32 %v640_v17, %v552_v11  ;;  %v939_v35 = vmax.f32 %v828_v22, %v907_v29 }
 0x1af   : > { %v692_v24 = vmul.f32 0.01, %v641_v23 }
 0x1b0   : > { %v829_v25 = vpop.f32.mrf.mxu2 }
 0x1b1   : > { %v724_v31 = vmax.f32 %v641_v23, %v692_v24  ;;  %v830_v9 = vadd.f32 %v829_v25, %v2403_v59 }
 0x1b3   : > { %v908_v20 = vmul.f32 0.01, %v830_v9  ;;  %v746_v32 = vpack.c.bf16 %v724_v31, %v723_v26  ;;  %v571_v31 = vpop.f32.mrf.mxu3 }
 0x1b4   : > { %v643_v14 = vpop.f32.mrf.mxu1 }
 0x1b5   : > { %v940_v36 = vmax.f32 %v830_v9, %v908_v20  ;;  %871 = vmatmul.bf16.gmra.mxu2 %v746_v32  ;;  %v644_v39 = vadd.f32 %v643_v14, %v555_v34 }
 0x1b7   : > { %v971_v37 = vpack.c.bf16 %v940_v36, %v939_v35  ;;  %v693_v42 = vmul.f32 0.01, %v644_v39 }
 0x1b8   : > { %v832_v38 = vpop.f32.mrf.mxu2 }
 0x1b9   : > { %1061 = vmatmul.bf16.vlgmr.msrb.gmra.mxu3 %v971_v37  ;;  %v833_v43 = vadd.f32 %v832_v38, %v2403_v59  ;;  %v725_v48 = vmax.f32 %v644_v39, %v693_v42  ;;  %v570_v38 = vadd.f32 %v569_v15, %v2342_v33 }
 0x1bb   : > { %v909_v19 = vmul.f32 0.01, %v833_v43 }
 0x1bc   : > { %v645_v41 = vpop.f32.mrf.mxu1 }
 0x1bd   : > { %v646_v44 = vadd.f32 %v645_v41, %v557_v40  ;;  %v941_v54 = vmax.f32 %v833_v43, %v909_v19  ;;  %v574_v43 = vpop.f32.mrf.mxu3 }
 0x1bf   : > { %v694_v45 = vmul.f32 0.01, %v646_v44 }
 0x1c0   : > { %v834_v46 = vpop.f32.mrf.mxu2 }
 0x1c1   : > { %v726_v49 = vmax.f32 %v646_v44, %v694_v45  ;;  %v835_v50 = vadd.f32 %v834_v46, %v2403_v59  ;;  %v572_v44 = vadd.f32 %v571_v31, %v2342_v33 }
 0x1c3   : > { %v910_v47 = vmul.f32 0.01, %v835_v50  ;;  %v747_v51 = vpack.c.bf16 %v726_v49, %v725_v48 }
 0x1c4   : > { %v648_v53 = vpop.f32.mrf.mxu1 }
 0x1c5   : > { %876 = vmatmul.bf16.gmra.mxu2 %v747_v51  ;;  %v942_v55 = vmax.f32 %v835_v50, %v910_v47  ;;  %v649_v58 = vadd.f32 %v648_v53, %v560_v52 }
 0x1c7   : > { %v972_v56 = vpack.c.bf16 %v942_v55, %v941_v54  ;;  %v695_v0 = vmul.f32 0.01, %v649_v58  ;;  %v1781_v54 = vld [vmem:[#allocation7 + $0xb8] sm:$0xff] }
 0x1c8   : > { %v837_v57 = vpop.f32.mrf.mxu2  ;;  %1288 = vmatpush.bf16.msrb.mxu0 %v1781_v54 }
 0x1c9   : > { %1066 = vmatmul.bf16.gmra.mxu3 %v972_v56  ;;  %v838_v27 = vadd.f32 %v837_v57, %v2403_v59  ;;  %v727_v5 = vmax.f32 %v649_v58, %v695_v0  ;;  %v576_v56 = vpop.f32.mrf.mxu3 }
 0x1cb   : > { %v911_v6 = vmul.f32 0.01, %v838_v27 }
 0x1cc   : > { %v650_v61 = vpop.f32.mrf.mxu1  ;;  %1289 = vmatpush.bf16.msrb.mxu0 %v1780_v62 }
 0x1cd   : > { %v651_v2 = vadd.f32 %v650_v61, %v562_v60  ;;  %v943_v12 = vmax.f32 %v838_v27, %v911_v6  ;;  %v575_v60 = vadd.f32 %v574_v43, %v2342_v33 }
 0x1cf   : > { %v696_v28 = vmul.f32 0.01, %v651_v2 }
 0x1d0   : > { %v839_v3 = vpop.f32.mrf.mxu2 }
 0x1d1   : > { %v728_v7 = vmax.f32 %v651_v2, %v696_v28  ;;  %v840_v8 = vadd.f32 %v839_v3, %v2403_v59  ;;  %v577_v28 = vadd.f32 %v576_v56, %v2342_v33  ;;  %v1774_v56 = vld [vmem:[#allocation7 + $0x80] sm:$0xff] }
 0x1d3   : > { %v912_v1 = vmul.f32 0.01, %v840_v8  ;;  %v748_v10 = vpack.c.bf16 %v728_v7, %v727_v5 }
 0x1d4   : > { %v653_v4 = vpop.f32.mrf.mxu1 }
 0x1d5   : > { %881 = vmatmul.bf16.gmra.mxu2 %v748_v10  ;;  %v944_v63 = vmax.f32 %v840_v8, %v912_v1  ;;  %v654_v17 = vadd.f32 %v653_v4, %v565_v13  ;;  %v1779_v8 = vld [vmem:[#allocation7 + $0xa8] sm:$0xff]  ;;  %v579_v1 = vpop.f32.mrf.mxu3 }
 0x1d6   : > { %1290 = vmatpush.bf16.msrb.mxu0 %v1779_v8 }
 0x1d7   : > { %v973_v16 = vpack.c.bf16 %v944_v63, %v943_v12  ;;  %v697_v23 = vmul.f32 0.01, %v654_v17 }
 0x1d8   : > { %v842_v11 = vpop.f32.mrf.mxu2 }
 0x1d9   : > { %1071 = vmatmul.bf16.gmra.mxu3 %v973_v16  ;;  %v843_v24 = vadd.f32 %v842_v11, %v2403_v59  ;;  %v729_v9 = vmax.f32 %v654_v17, %v697_v23 }
 0x1db   : > { %v913_v20 = vmul.f32 0.01, %v843_v24 }
 0x1dc   : > { %v655_v22 = vpop.f32.mrf.mxu1 }
 0x1dd   : > { %v656_v25 = vadd.f32 %v655_v22, %v567_v18  ;;  %v945_v37 = vmax.f32 %v843_v24, %v913_v20  ;;  %v580_v22 = vadd.f32 %v579_v1, %v2342_v33  ;;  %v1778_v24 = vld [vmem:[#allocation7 + $0xa0] sm:$0xff] }
 0x1de   : > { %1291 = vmatpush.bf16.msrb.mxu0 %v1778_v24 }
 0x1df   : > { %v698_v26 = vmul.f32 0.01, %v656_v25 }
 0x1e0   : > { %v844_v29 = vpop.f32.mrf.mxu2 }
 0x1e1   : > { %v730_v32 = vmax.f32 %v656_v25, %v698_v26  ;;  %v845_v14 = vadd.f32 %v844_v29, %v2403_v59  ;;  %v581_v26 = vpop.f32.mrf.mxu3 }
 0x1e3   : > { %v914_v35 = vmul.f32 0.01, %v845_v14  ;;  %v749_v36 = vpack.c.bf16 %v730_v32, %v729_v9  ;;  %v582_v9 = vadd.f32 %v581_v26, %v2342_v33  ;;  %v1776_v33 = vld [vmem:[#allocation7 + $0x90] sm:$0xff] }
 0x1e4   : > { %v658_v34 = vpop.f32.mrf.mxu1 }
 0x1e5   : > { %886 = vmatmul.bf16.gmra.mxu2 %v749_v36  ;;  %v946_v39 = vmax.f32 %v845_v14, %v914_v35  ;;  %v659_v42 = vadd.f32 %v658_v34, %v570_v38  ;;  %v1777_v36 = vld [vmem:[#allocation7 + $0x98] sm:$0xff] }
 0x1e6   : > { %1292 = vmatpush.bf16.msrb.mxu0 %v1777_v36 }
 0x1e7   : > { %v974_v40 = vpack.c.bf16 %v946_v39, %v945_v37  ;;  %v699_v46 = vmul.f32 0.01, %v659_v42 }
 0x1e8   : > { %v847_v41 = vpop.f32.mrf.mxu2 }
 0x1e9   : > { %1076 = vmatmul.bf16.gmra.mxu3 %v974_v40  ;;  %v848_v48 = vadd.f32 %v847_v41, %v2403_v59  ;;  %v731_v21 = vmax.f32 %v659_v42, %v699_v46 }
 0x1ea   : > { %1293 = vmatpush.bf16.msrb.mxu0 %v1776_v33 }
 0x1eb   : > { %v915_v47 = vmul.f32 0.01, %v848_v48 }
 0x1ec   : > { %v660_v45 = vpop.f32.mrf.mxu1 }
 0x1ed   : > { %v661_v19 = vadd.f32 %v660_v45, %v572_v44  ;;  %v947_v58 = vmax.f32 %v848_v48, %v915_v47  ;;  %v1775_v47 = vld [vmem:[#allocation7 + $0x88] sm:$0xff] }
 0x1ee   : > { %1294 = vmatpush.bf16.msrb.mxu0 %v1775_v47 }
 0x1ef   : > { %v700_v49 = vmul.f32 0.01, %v661_v19 }
 0x1f0   : > { %v849_v50 = vpop.f32.mrf.mxu2 }
 0x1f1   : > { %v732_v51 = vmax.f32 %v661_v19, %v700_v49  ;;  %v850_v53 = vadd.f32 %v849_v50, %v2403_v59 }
 0x1f2   : > { %1295 = vmatpush.bf16.msrb.mxu0 %v1774_v56 }
 0x1f3   : > { %v916_v55 = vmul.f32 0.01, %v850_v53  ;;  %v750_v52 = vpack.c.bf16 %v732_v51, %v731_v21 }
 0x1f4   : > { %v663_v57 = vpop.f32.mrf.mxu1 }
 0x1f5   : > { %v948_v61 = vmax.f32 %v850_v53, %v916_v55  ;;  %891 = vmatmul.bf16.gmra.mxu2 %v750_v52  ;;  %v664_v2 = vadd.f32 %v663_v57, %v575_v60 }
 0x1f7   : > { %v975_v0 = vpack.c.bf16 %v948_v61, %v947_v58  ;;  %v701_v5 = vmul.f32 0.01, %v664_v2 }
 0x1f8   : > { %v852_v27 = vpop.f32.mrf.mxu2 }
 0x1f9   : > { %1081 = vmatmul.bf16.gmra.mxu3 %v975_v0  ;;  %v853_v6 = vadd.f32 %v852_v27, %v2403_v59  ;;  %v733_v12 = vmax.f32 %v664_v2, %v701_v5 }
 0x1fb   : > { %v917_v13 = vmul.f32 0.01, %v853_v6 }
 0x1fc   : > { %v665_v3 = vpop.f32.mrf.mxu1 }
 0x1fd   : > { %v666_v7 = vadd.f32 %v665_v3, %v577_v28  ;;  %v949_v18 = vmax.f32 %v853_v6, %v917_v13  ;;  %v2438_v6 = vperm.slane %v2337_v30, 2 }
 0x1ff   : > { %v702_v10 = vmul.f32 0.01, %v666_v7 }
 0x200   : > { %v854_v4 = vpop.f32.mrf.mxu2 }
 0x201   : > { %v734_v63 = vmax.f32 %v666_v7, %v702_v10  ;;  %v855_v15 = vadd.f32 %v854_v4, %v2403_v59 }
 0x203   : > { %v918_v16 = vmul.f32 0.01, %v855_v15  ;;  %v751_v11 = vpack.c.bf16 %v734_v63, %v733_v12 }
 0x204   : > { %v668_v17 = vpop.f32.mrf.mxu1 }
 0x205   : > { %v950_v23 = vmax.f32 %v855_v15, %v918_v16  ;;  %896 = vmatmul.bf16.gmra.mxu2 %v751_v11  ;;  %v669_v31 = vadd.f32 %v668_v17, %v580_v22 }
 0x207   : > { %v976_v25 = vpack.c.bf16 %v950_v23, %v949_v18  ;;  %v703_v32 = vmul.f32 0.01, %v669_v31 }
 0x208   : > { %v857_v29 = vpop.f32.mrf.mxu2 }
 0x209   : > { %1086 = vmatmul.bf16.gmra.mxu3 %v976_v25  ;;  %v858_v14 = vadd.f32 %v857_v29, %v2403_v59  ;;  %v735_v38 = vmax.f32 %v669_v31, %v703_v32 }
 0x20b   : > { %v919_v39 = vmul.f32 0.01, %v858_v14 }
 0x20c   : > { %v670_v20 = vpop.f32.mrf.mxu1 }
 0x20d   : > { %v671_v35 = vadd.f32 %v670_v20, %v582_v9  ;;  %v951_v44 = vmax.f32 %v858_v14, %v919_v39 }
 0x20f   : > { %v704_v34 = vmul.f32 0.01, %v671_v35 }
 0x210   : > { %v859_v37 = vpop.f32.mrf.mxu2 }
 0x211   : > { %v736_v40 = vmax.f32 %v671_v35, %v704_v34  ;;  %v860_v41 = vadd.f32 %v859_v37, %v2403_v59 }
 0x213   : > { %v920_v42 = vmul.f32 0.01, %v860_v41  ;;  %v752_v43 = vpack.c.bf16 %v736_v40, %v735_v38 }
 0x215   : > { %v952_v45 = vmax.f32 %v860_v41, %v920_v42  ;;  %901 = vmatmul.bf16.gmra.mxu2 %v752_v43 }
 0x217   : > { %v977_v46 = vpack.c.bf16 %v952_v45, %v951_v44 }
 0x218   : > { %v862_v48 = vpop.f32.mrf.mxu2 }
 0x219   : > { %1091 = vmatmul.bf16.gmra.mxu3 %v977_v46  ;;  %v863_v19 = vadd.f32 %v862_v48, %v2403_v59 }
 0x21b   : > { %v921_v50 = vmul.f32 0.01, %v863_v19 }
 0x21d   : > { %v953_v53 = vmax.f32 %v863_v19, %v921_v50 }
 0x220   : > { %v864_v49 = vpop.f32.mrf.mxu2 }
 0x221   : > { %v865_v21 = vadd.f32 %v864_v49, %v2403_v59 }
 0x223   : > { %v922_v51 = vmul.f32 0.01, %v865_v21 }
 0x225   : > { %v954_v54 = vmax.f32 %v865_v21, %v922_v51 }
 0x227   : > { %v978_v55 = vpack.c.bf16 %v954_v54, %v953_v53 }
 0x228   : > { %v867_v52 = vpop.f32.mrf.mxu2 }
 0x229   : > { %1096 = vmatmul.bf16.gmra.mxu3 %v978_v55  ;;  %v868_v57 = vadd.f32 %v867_v52, %v2403_v59 }
 0x22b   : > { %v923_v60 = vmul.f32 0.01, %v868_v57 }
 0x22d   : > { %v955_v0 = vmax.f32 %v868_v57, %v923_v60 }
 0x230   : > { %v869_v58 = vpop.f32.mrf.mxu2 }
 0x231   : > { %v870_v61 = vadd.f32 %v869_v58, %v2403_v59 }
 0x233   : > { %v924_v62 = vmul.f32 0.01, %v870_v61 }
 0x235   : > { %v956_v27 = vmax.f32 %v870_v61, %v924_v62 }
 0x237   : > { %v979_v2 = vpack.c.bf16 %v956_v27, %v955_v0 }
 0x238   : > { %v872_v28 = vpop.f32.mrf.mxu2 }
 0x239   : > { %1101 = vmatmul.bf16.gmra.mxu3 %v979_v2  ;;  %v873_v5 = vadd.f32 %v872_v28, %v2403_v59 }
 0x23b   : > { %v925_v8 = vmul.f32 0.01, %v873_v5 }
 0x23c   : > { %v1062_v3 = vpop.f32.mrf.mxu3 }
 0x23d   : > { %v1063_v1 = vadd.f32 %v1062_v3, %v2438_v6  ;;  %v957_v13 = vmax.f32 %v873_v5, %v925_v8 }
 0x23f   : > { %v1142_v63 = vmul.f32 0.01, %v1063_v1 }
 0x240   : > { %v874_v7 = vpop.f32.mrf.mxu2 }
 0x241   : > { %v875_v10 = vadd.f32 %v874_v7, %v2403_v59  ;;  %v1174_v22 = vmax.f32 %v1063_v1, %v1142_v63 }
 0x243   : > { %v926_v4 = vmul.f32 0.01, %v875_v10 }
 0x244   : > { %v1064_v12 = vpop.f32.mrf.mxu3 }
 0x245   : > { %v958_v15 = vmax.f32 %v875_v10, %v926_v4  ;;  %v1065_v16 = vadd.f32 %v1064_v12, %v2438_v6 }
 0x247   : > { %v1143_v11 = vmul.f32 0.01, %v1065_v16  ;;  %v980_v17 = vpack.c.bf16 %v958_v15, %v957_v13 }
 0x248   : > { %v877_v18 = vpop.f32.mrf.mxu2 }
 0x249   : > { %v1175_v23 = vmax.f32 %v1065_v16, %v1143_v11  ;;  %1106 = vmatmul.bf16.gmra.mxu3 %v980_v17  ;;  %v878_v25 = vadd.f32 %v877_v18, %v2403_v59 }
 0x24b   : > { %v1206_v30 = vpack.c.bf16 %v1175_v23, %v1174_v22  ;;  %v927_v29 = vmul.f32 0.01, %v878_v25 }
 0x24c   : > { %v1067_v24 = vpop.f32.mrf.mxu3 }
 0x24d   : > { %1296 = vmatmul.bf16.vlgmr.msrb.gmra.mxu0 %v1206_v30  ;;  %v1068_v31 = vadd.f32 %v1067_v24, %v2438_v6  ;;  %v959_v14 = vmax.f32 %v878_v25, %v927_v29 }
 0x24f   : > { %v1144_v35 = vmul.f32 0.01, %v1068_v31 }
 0x250   : > { %v879_v26 = vpop.f32.mrf.mxu2 }
 0x251   : > { %v880_v9 = vadd.f32 %v879_v26, %v2403_v59  ;;  %v1176_v40 = vmax.f32 %v1068_v31, %v1144_v35 }
 0x253   : > { %v928_v20 = vmul.f32 0.01, %v880_v9 }
 0x254   : > { %v1069_v32 = vpop.f32.mrf.mxu3 }
 0x255   : > { %v960_v36 = vmax.f32 %v880_v9, %v928_v20  ;;  %v1070_v34 = vadd.f32 %v1069_v32, %v2438_v6 }
 0x257   : > { %v1145_v37 = vmul.f32 0.01, %v1070_v34  ;;  %v981_v38 = vpack.c.bf16 %v960_v36, %v959_v14 }
 0x258   : > { %v882_v39 = vpop.f32.mrf.mxu2 }
 0x259   : > { %1111 = vmatmul.bf16.gmra.mxu3 %v981_v38  ;;  %v1177_v41 = vmax.f32 %v1070_v34, %v1145_v37  ;;  %v883_v44 = vadd.f32 %v882_v39, %v2403_v59 }
 0x25b   : > { %v1207_v42 = vpack.c.bf16 %v1177_v41, %v1176_v40  ;;  %v929_v33 = vmul.f32 0.01, %v883_v44 }
 0x25c   : > { %v1072_v43 = vpop.f32.mrf.mxu3 }
 0x25d   : > { %1301 = vmatmul.bf16.gmra.mxu0 %v1207_v42  ;;  %v1073_v46 = vadd.f32 %v1072_v43, %v2438_v6  ;;  %v961_v50 = vmax.f32 %v883_v44, %v929_v33 }
 0x25f   : > { %v1146_v21 = vmul.f32 0.01, %v1073_v46 }
 0x260   : > { %v884_v45 = vpop.f32.mrf.mxu2 }
 0x261   : > { %v885_v48 = vadd.f32 %v884_v45, %v2403_v59  ;;  %v1178_v52 = vmax.f32 %v1073_v46, %v1146_v21 }
 0x263   : > { %v930_v19 = vmul.f32 0.01, %v885_v48 }
 0x264   : > { %v1074_v49 = vpop.f32.mrf.mxu3 }
 0x265   : > { %v962_v47 = vmax.f32 %v885_v48, %v930_v19  ;;  %v1075_v51 = vadd.f32 %v1074_v49, %v2438_v6 }
 0x267   : > { %v1147_v53 = vmul.f32 0.01, %v1075_v51  ;;  %v982_v54 = vpack.c.bf16 %v962_v47, %v961_v50 }
 0x268   : > { %v887_v55 = vpop.f32.mrf.mxu2 }
 0x269   : > { %1116 = vmatmul.bf16.gmra.mxu3 %v982_v54  ;;  %v1179_v56 = vmax.f32 %v1075_v51, %v1147_v53  ;;  %v888_v60 = vadd.f32 %v887_v55, %v2403_v59 }
 0x26b   : > { %v1208_v57 = vpack.c.bf16 %v1179_v56, %v1178_v52  ;;  %v931_v62 = vmul.f32 0.01, %v888_v60 }
 0x26c   : > { %v1077_v58 = vpop.f32.mrf.mxu3 }
 0x26d   : > { %1306 = vmatmul.bf16.gmra.mxu0 %v1208_v57  ;;  %v1078_v0 = vadd.f32 %v1077_v58, %v2438_v6  ;;  %v963_v3 = vmax.f32 %v888_v60, %v931_v62 }
 0x26f   : > { %v1148_v5 = vmul.f32 0.01, %v1078_v0 }
 0x270   : > { %v889_v61 = vpop.f32.mrf.mxu2 }
 0x271   : > { %v890_v27 = vadd.f32 %v889_v61, %v2403_v59  ;;  %v1180_v12 = vmax.f32 %v1078_v0, %v1148_v5 }
 0x273   : > { %v932_v2 = vmul.f32 0.01, %v890_v27 }
 0x274   : > { %v1079_v28 = vpop.f32.mrf.mxu3 }
 0x275   : > { %v964_v7 = vmax.f32 %v890_v27, %v932_v2  ;;  %v1080_v8 = vadd.f32 %v1079_v28, %v2438_v6 }
 0x277   : > { %v1149_v1 = vmul.f32 0.01, %v1080_v8  ;;  %v983_v10 = vpack.c.bf16 %v964_v7, %v963_v3 }
 0x278   : > { %v892_v4 = vpop.f32.mrf.mxu2 }
 0x279   : > { %1121 = vmatmul.bf16.gmra.mxu3 %v983_v10  ;;  %v1181_v13 = vmax.f32 %v1080_v8, %v1149_v1  ;;  %v893_v16 = vadd.f32 %v892_v4, %v2403_v59 }
 0x27b   : > { %v1209_v63 = vpack.c.bf16 %v1181_v13, %v1180_v12  ;;  %v933_v17 = vmul.f32 0.01, %v893_v16 }
 0x27c   : > { %v1082_v15 = vpop.f32.mrf.mxu3 }
 0x27d   : > { %1311 = vmatmul.bf16.gmra.mxu0 %v1209_v63  ;;  %v1083_v18 = vadd.f32 %v1082_v15, %v2438_v6  ;;  %v965_v24 = vmax.f32 %v893_v16, %v933_v17 }
 0x27f   : > { %v1150_v25 = vmul.f32 0.01, %v1083_v18 }
 0x280   : > { %v894_v11 = vpop.f32.mrf.mxu2 }
 0x281   : > { %v895_v22 = vadd.f32 %v894_v11, %v2403_v59  ;;  %v1182_v32 = vmax.f32 %v1083_v18, %v1150_v25 }
 0x283   : > { %v934_v23 = vmul.f32 0.01, %v895_v22 }
 0x284   : > { %v1084_v30 = vpop.f32.mrf.mxu3 }
 0x285   : > { %v966_v26 = vmax.f32 %v895_v22, %v934_v23  ;;  %v1085_v29 = vadd.f32 %v1084_v30, %v2438_v6  ;;  %v1890_v22 = vld [vmem:[#allocation8] sm:$0xf] }
 0x286   : > { %v2471_v23 = vperm.slane %v1890_v22, 3 }
 0x287   : > { %v1151_v31 = vmul.f32 0.01, %v1085_v29  ;;  %v984_v9 = vpack.c.bf16 %v966_v26, %v965_v24 }
 0x288   : > { %v897_v20 = vpop.f32.mrf.mxu2 }
 0x289   : > { %v1183_v14 = vmax.f32 %v1085_v29, %v1151_v31  ;;  %1126 = vmatmul.bf16.gmra.mxu3 %v984_v9  ;;  %v898_v34 = vadd.f32 %v897_v20, %v2403_v59  ;;  %v1891_v9 = vld [vmem:[%s2267_s20 + $0x8] sm:$0xff] }
 0x28b   : > { %v1210_v35 = vpack.c.bf16 %v1183_v14, %v1182_v32  ;;  %v935_v38 = vmul.f32 0.01, %v898_v34 }
 0x28c   : > { %v1087_v36 = vpop.f32.mrf.mxu3 }
 0x28d   : > { %1316 = vmatmul.bf16.gmra.mxu0 %v1210_v35  ;;  %v1088_v39 = vadd.f32 %v1087_v36, %v2438_v6  ;;  %v967_v43 = vmax.f32 %v898_v34, %v935_v38 }
 0x28f   : > { %v1152_v44 = vmul.f32 0.01, %v1088_v39 }
 0x290   : > { %v899_v37 = vpop.f32.mrf.mxu2 }
 0x291   : > { %v900_v40 = vadd.f32 %v899_v37, %v2403_v59  ;;  %v1184_v49 = vmax.f32 %v1088_v39, %v1152_v44  ;;  %v1892_v37 = vld [vmem:[%s2267_s20 + $0x18] sm:$0xff] }
 0x293   : > { %v936_v41 = vmul.f32 0.01, %v900_v40 }
 0x294   : > { %v1089_v42 = vpop.f32.mrf.mxu3 }
 0x295   : > { %v968_v45 = vmax.f32 %v900_v40, %v936_v41  ;;  %v1090_v33 = vadd.f32 %v1089_v42, %v2438_v6 }
 0x297   : > { %v1153_v46 = vmul.f32 0.01, %v1090_v33  ;;  %v985_v48 = vpack.c.bf16 %v968_v45, %v967_v43 }
 0x298   : > { %v902_v19 = vpop.f32.mrf.mxu2 }
 0x299   : > { %v1185_v50 = vmax.f32 %v1090_v33, %v1153_v46  ;;  %1131 = vmatmul.bf16.gmra.mxu3 %v985_v48  ;;  %v903_v51 = vadd.f32 %v902_v19, %v2403_v59  ;;  %v1893_v46 = vld [vmem:[%s2267_s20 + $0x28] sm:$0xff] }
 0x29b   : > { %v1211_v21 = vpack.c.bf16 %v1185_v50, %v1184_v49  ;;  %v937_v54 = vmul.f32 0.01, %v903_v51 }
 0x29c   : > { %v1092_v47 = vpop.f32.mrf.mxu3 }
 0x29d   : > { %1321 = vmatmul.bf16.gmra.mxu0 %v1211_v21  ;;  %v1093_v55 = vadd.f32 %v1092_v47, %v2438_v6  ;;  %v969_v58 = vmax.f32 %v903_v51, %v937_v54  ;;  %v1894_v51 = vld [vmem:[%s2267_s20 + $0x38] sm:$0xff] }
 0x29f   : > { %v1154_v60 = vmul.f32 0.01, %v1093_v55 }
 0x2a0   : > { %v904_v53 = vpop.f32.mrf.mxu2 }
 0x2a1   : > { %v905_v52 = vadd.f32 %v904_v53, %v2403_v59  ;;  %v1186_v2 = vmax.f32 %v1093_v55, %v1154_v60 }
 0x2a3   : > { %v938_v56 = vmul.f32 0.01, %v905_v52 }
 0x2a4   : > { %v1094_v57 = vpop.f32.mrf.mxu3 }
 0x2a5   : > { %v970_v61 = vmax.f32 %v905_v52, %v938_v56  ;;  %v1095_v62 = vadd.f32 %v1094_v57, %v2438_v6 }
 0x2a7   : > { %v1155_v0 = vmul.f32 0.01, %v1095_v62  ;;  %v986_v27 = vpack.c.bf16 %v970_v61, %v969_v58 }
 0x2a9   : > { %v1187_v28 = vmax.f32 %v1095_v62, %v1155_v0  ;;  %1136 = vmatmul.bf16.gmra.mxu3 %v986_v27  ;;  %v1895_v62 = vld [vmem:[%s2267_s20 + $0x48] sm:$0xff] }
 0x2ab   : > { %v1212_v3 = vpack.c.bf16 %v1187_v28, %v1186_v2 }
 0x2ac   : > { %v1097_v5 = vpop.f32.mrf.mxu3 }
 0x2ad   : > { %1326 = vmatmul.bf16.gmra.mxu0 %v1212_v3  ;;  %v1098_v7 = vadd.f32 %v1097_v5, %v2438_v6 }
 0x2af   : > { %v1156_v1 = vmul.f32 0.01, %v1098_v7 }
 0x2b1   : > { %v1188_v4 = vmax.f32 %v1098_v7, %v1156_v1  ;;  %v1896_v7 = vld [vmem:[%s2267_s20 + $0x58] sm:$0xff] }
 0x2b4   : > { %v1099_v8 = vpop.f32.mrf.mxu3 }
 0x2b5   : > { %v1100_v59 = vadd.f32 %v1099_v8, %v2438_v6 }
 0x2b7   : > { %v1157_v10 = vmul.f32 0.01, %v1100_v59 }
 0x2b9   : > { %v1189_v12 = vmax.f32 %v1100_v59, %v1157_v10 }
 0x2bb   : > { %v1213_v13 = vpack.c.bf16 %v1189_v12, %v1188_v4 }
 0x2bc   : > { %v1102_v63 = vpop.f32.mrf.mxu3 }
 0x2bd   : > { %1331 = vmatmul.bf16.gmra.mxu0 %v1213_v13  ;;  %v1103_v15 = vadd.f32 %v1102_v63, %v2438_v6 }
 0x2bf   : > { %v1158_v11 = vmul.f32 0.01, %v1103_v15 }
 0x2c1   : > { %v1190_v30 = vmax.f32 %v1103_v15, %v1158_v11 }
 0x2c4   : > { %v1104_v16 = vpop.f32.mrf.mxu3 }
 0x2c5   : > { %v1105_v17 = vadd.f32 %v1104_v16, %v2438_v6  ;;  %v1897_v16 = vld [vmem:[%s2267_s20 + $0x68] sm:$0xff] }
 0x2c7   : > { %v1159_v18 = vmul.f32 0.01, %v1105_v17 }
 0x2c9   : > { %v1191_v24 = vmax.f32 %v1105_v17, %v1159_v18 }
 0x2ca   : > { %v1297_v25 = vpop.f32.mrf.mxu0 }
 0x2cb   : > { %v1298_v26 = vadd.f32 %v1297_v25, %v2471_v23  ;;  %v1214_v29 = vpack.c.bf16 %v1191_v24, %v1190_v30  ;;  %v1898_v25 = vld [vmem:[%s2267_s20 + $0x78] sm:$0xff] }
 0x2cc   : > { %v1107_v31 = vpop.f32.mrf.mxu3 }
 0x2cd   : > { %v1377_v20 = vmul.f32 %v1891_v9, %v1298_v26  ;;  %1336 = vmatmul.bf16.gmra.mxu0 %v1214_v29  ;;  %v1108_v32 = vadd.f32 %v1107_v31, %v2438_v6 }
 0x2cf   : > { %1409 = vst [vmem:[%s2476_s26] sm:$0xff] %v1377_v20  ;;  %v1160_v34 = vmul.f32 0.01, %v1108_v32 }
 0x2d1   : > { %v1192_v41 = vmax.f32 %v1108_v32, %v1160_v34  ;;  %v1899_v34 = vld [vmem:[%s2267_s20 + $0x88] sm:$0xff] }
 0x2d2   : > { %v1299_v14 = vpop.f32.mrf.mxu0 }
 0x2d3   : > { %v1300_v35 = vadd.f32 %v1299_v14, %v2471_v23 }
 0x2d4   : > { %v1109_v36 = vpop.f32.mrf.mxu3 }
 0x2d5   : > { %v1378_v38 = vmul.f32 %v1892_v37, %v1300_v35  ;;  %v1110_v39 = vadd.f32 %v1109_v36, %v2438_v6 }
 0x2d7   : > { %1410 = vst [vmem:[%s2476_s26 + $0x8] sm:$0xff] %v1378_v38  ;;  %v1161_v40 = vmul.f32 0.01, %v1110_v39 }
 0x2d9   : > { %v1193_v42 = vmax.f32 %v1110_v39, %v1161_v40 }
 0x2da   : > { %v1302_v43 = vpop.f32.mrf.mxu0 }
 0x2db   : > { %v1303_v44 = vadd.f32 %v1302_v43, %v2471_v23  ;;  %v1215_v45 = vpack.c.bf16 %v1193_v42, %v1192_v41  ;;  %v1900_v43 = vld [vmem:[%s2267_s20 + $0x98] sm:$0xff] }
 0x2dc   : > { %v1112_v33 = vpop.f32.mrf.mxu3 }
 0x2dd   : > { %v1379_v48 = vmul.f32 %v1893_v46, %v1303_v44  ;;  %1341 = vmatmul.bf16.gmra.mxu0 %v1215_v45  ;;  %v1113_v19 = vadd.f32 %v1112_v33, %v2438_v6 }
 0x2df   : > { %1411 = vst [vmem:[%s2476_s26 + $0x10] sm:$0xff] %v1379_v48  ;;  %v1162_v47 = vmul.f32 0.01, %v1113_v19 }
 0x2e1   : > { %v1194_v52 = vmax.f32 %v1113_v19, %v1162_v47  ;;  %v1901_v47 = vld [vmem:[%s2267_s20 + $0xa8] sm:$0xff] }
 0x2e2   : > { %v1304_v49 = vpop.f32.mrf.mxu0 }
 0x2e3   : > { %v1305_v50 = vadd.f32 %v1304_v49, %v2471_v23 }
 0x2e4   : > { %v1114_v21 = vpop.f32.mrf.mxu3 }
 0x2e5   : > { %v1380_v53 = vmul.f32 %v1894_v51, %v1305_v50  ;;  %v1115_v54 = vadd.f32 %v1114_v21, %v2438_v6 }
 0x2e7   : > { %1412 = vst [vmem:[%s2476_s26 + $0x18] sm:$0xff] %v1380_v53  ;;  %v1163_v55 = vmul.f32 0.01, %v1115_v54 }
 0x2e9   : > { %v1195_v56 = vmax.f32 %v1115_v54, %v1163_v55 }
 0x2ea   : > { %v1307_v57 = vpop.f32.mrf.mxu0 }
 0x2eb   : > { %v1308_v58 = vadd.f32 %v1307_v57, %v2471_v23  ;;  %v1216_v60 = vpack.c.bf16 %v1195_v56, %v1194_v52  ;;  %v1902_v57 = vld [vmem:[%s2267_s20 + $0xb8] sm:$0xff] }
 0x2ec   : > { %v1117_v61 = vpop.f32.mrf.mxu3 }
 0x2ed   : > { %v1381_v0 = vmul.f32 %v1895_v62, %v1308_v58  ;;  %1346 = vmatmul.bf16.gmra.mxu0 %v1216_v60  ;;  %v1118_v27 = vadd.f32 %v1117_v61, %v2438_v6 }
 0x2ef   : > { %1413 = vst [vmem:[%s2476_s26 + $0x20] sm:$0xff] %v1381_v0  ;;  %v1164_v5 = vmul.f32 0.01, %v1118_v27 }
 0x2f1   : > { %v1196_v10 = vmax.f32 %v1118_v27, %v1164_v5  ;;  %v1903_v5 = vld [vmem:[%s2267_s20 + $0xc8] sm:$0xff] }
 0x2f2   : > { %v1309_v2 = vpop.f32.mrf.mxu0 }
 0x2f3   : > { %v1310_v28 = vadd.f32 %v1309_v2, %v2471_v23 }
 0x2f4   : > { %v1119_v3 = vpop.f32.mrf.mxu3 }
 0x2f5   : > { %v1382_v8 = vmul.f32 %v1896_v7, %v1310_v28  ;;  %v1120_v1 = vadd.f32 %v1119_v3, %v2438_v6 }
 0x2f7   : > { %1414 = vst [vmem:[%s2476_s26 + $0x28] sm:$0xff] %v1382_v8  ;;  %v1165_v59 = vmul.f32 0.01, %v1120_v1 }
 0x2f9   : > { %v1197_v4 = vmax.f32 %v1120_v1, %v1165_v59 }
 0x2fa   : > { %v1312_v12 = vpop.f32.mrf.mxu0 }
 0x2fb   : > { %v1313_v13 = vadd.f32 %v1312_v12, %v2471_v23  ;;  %v1217_v63 = vpack.c.bf16 %v1197_v4, %v1196_v10  ;;  %v1904_v12 = vld [vmem:[%s2267_s20 + $0xd8] sm:$0xff] }
 0x2fc   : > { %v1122_v15 = vpop.f32.mrf.mxu3 }
 0x2fd   : > { %v1383_v11 = vmul.f32 %v1897_v16, %v1313_v13  ;;  %1351 = vmatmul.bf16.gmra.mxu0 %v1217_v63  ;;  %v1123_v17 = vadd.f32 %v1122_v15, %v2438_v6 }
 0x2ff   : > { %1415 = vst [vmem:[%s2476_s26 + $0x30] sm:$0xff] %v1383_v11  ;;  %v1166_v24 = vmul.f32 0.01, %v1123_v17 }
 0x301   : > { %v1198_v9 = vmax.f32 %v1123_v17, %v1166_v24 }
 0x302   : > { %v1314_v18 = vpop.f32.mrf.mxu0 }
 0x303   : > { %v1315_v22 = vadd.f32 %v1314_v18, %v2471_v23 }
 0x304   : > { %v1124_v30 = vpop.f32.mrf.mxu3 }
 0x305   : > { %v1384_v26 = vmul.f32 %v1898_v25, %v1315_v22  ;;  %v1125_v29 = vadd.f32 %v1124_v30, %v2438_v6  ;;  %v1905_v30 = vld [vmem:[%s2267_s20 + $0xe8] sm:$0xff] }
 0x307   : > { %1416 = vst [vmem:[%s2476_s26 + $0x38] sm:$0xff] %v1384_v26  ;;  %v1167_v31 = vmul.f32 0.01, %v1125_v29  ;;  %v1906_v26 = vld [vmem:[%s2267_s20 + $0xf8] sm:$0xff] }
 0x309   : > { %v1199_v20 = vmax.f32 %v1125_v29, %v1167_v31 }
 0x30a   : > { %v1317_v32 = vpop.f32.mrf.mxu0 }
 0x30b   : > { %v1318_v14 = vadd.f32 %v1317_v32, %v2471_v23  ;;  %v1218_v35 = vpack.c.bf16 %v1199_v20, %v1198_v9  ;;  %v1907_v20 = vld [vmem:[%s2267_s20 + $0x108] sm:$0xff] }
 0x30c   : > { %v1127_v36 = vpop.f32.mrf.mxu3 }
 0x30d   : > { %v1385_v37 = vmul.f32 %v1899_v34, %v1318_v14  ;;  %1356 = vmatmul.bf16.gmra.mxu0 %v1218_v35  ;;  %v1128_v38 = vadd.f32 %v1127_v36, %v2438_v6  ;;  %v1908_v36 = vld [vmem:[%s2267_s20 + $0x118] sm:$0xff] }
 0x30f   : > { %1417 = vst [vmem:[%s2476_s26 + $0x40] sm:$0xff] %v1385_v37  ;;  %v1168_v42 = vmul.f32 0.01, %v1128_v38 }
 0x311   : > { %v1200_v46 = vmax.f32 %v1128_v38, %v1168_v42 }
 0x312   : > { %v1319_v39 = vpop.f32.mrf.mxu0 }
 0x313   : > { %v1320_v40 = vadd.f32 %v1319_v39, %v2471_v23  ;;  %v1909_v39 = vld [vmem:[%s2267_s20 + $0x128] sm:$0xff] }
 0x314   : > { %v1129_v41 = vpop.f32.mrf.mxu3 }
 0x315   : > { %v1386_v44 = vmul.f32 %v1900_v43, %v1320_v40  ;;  %v1130_v45 = vadd.f32 %v1129_v41, %v2438_v6  ;;  %v1910_v43 = vld [vmem:[%s2267_s20 + $0x138] sm:$0xff] }
 0x317   : > { %1418 = vst [vmem:[%s2476_s26 + $0x48] sm:$0xff] %v1386_v44  ;;  %v1169_v33 = vmul.f32 0.01, %v1130_v45 }
 0x319   : > { %v1201_v48 = vmax.f32 %v1130_v45, %v1169_v33 }
 0x31a   : > { %v1322_v19 = vpop.f32.mrf.mxu0 }
 0x31b   : > { %v1323_v49 = vadd.f32 %v1322_v19, %v2471_v23  ;;  %v1219_v50 = vpack.c.bf16 %v1201_v48, %v1200_v46  ;;  %v1911_v46 = vld [vmem:[%s2267_s20 + $0x148] sm:$0xff] }
 0x31c   : > { %v1132_v21 = vpop.f32.mrf.mxu3 }
 0x31d   : > { %v1387_v51 = vmul.f32 %v1901_v47, %v1323_v49  ;;  %1361 = vmatmul.bf16.gmra.mxu0 %v1219_v50  ;;  %v1133_v53 = vadd.f32 %v1132_v21, %v2438_v6  ;;  %v1912_v50 = vld [vmem:[%s2267_s20 + $0x158] sm:$0xff] }
 0x31f   : > { %1419 = vst [vmem:[%s2476_s26 + $0x50] sm:$0xff] %v1387_v51  ;;  %v1170_v56 = vmul.f32 0.01, %v1133_v53 }
 0x321   : > { %v1202_v62 = vmax.f32 %v1133_v53, %v1170_v56  ;;  %v1913_v53 = vld [vmem:[%s2267_s20 + $0x168] sm:$0xff]  ;;  %v1914_v56 = vld [vmem:[%s2267_s20 + $0x178] sm:$0xff] }
 0x322   : > { %v1324_v54 = vpop.f32.mrf.mxu0 }
 0x323   : > { %v1325_v55 = vadd.f32 %v1324_v54, %v2471_v23 }
 0x324   : > { %v1134_v52 = vpop.f32.mrf.mxu3 }
 0x325   : > { %v1388_v58 = vmul.f32 %v1902_v57, %v1325_v55  ;;  %v1135_v60 = vadd.f32 %v1134_v52, %v2438_v6 }
 0x327   : > { %1420 = vst [vmem:[%s2476_s26 + $0x58] sm:$0xff] %v1388_v58  ;;  %v1171_v61 = vmul.f32 0.01, %v1135_v60 }
 0x329   : > { %v1203_v0 = vmax.f32 %v1135_v60, %v1171_v61  ;;  %v1915_v61 = vld [vmem:[%s2267_s20 + $0x188] sm:$0xff] }
 0x32a   : > { %v1327_v27 = vpop.f32.mrf.mxu0 }
 0x32b   : > { %v1328_v2 = vadd.f32 %v1327_v27, %v2471_v23  ;;  %v1220_v28 = vpack.c.bf16 %v1203_v0, %v1202_v62 }
 0x32c   : > { %v1137_v3 = vpop.f32.mrf.mxu3 }
 0x32d   : > { %v1389_v7 = vmul.f32 %v1903_v5, %v1328_v2  ;;  %1366 = vmatmul.bf16.gmra.mxu0 %v1220_v28  ;;  %v1138_v8 = vadd.f32 %v1137_v3, %v2438_v6  ;;  %v1916_v2 = vld [vmem:[%s2267_s20 + $0x198] sm:$0xff] }
 0x32f   : > { %1421 = vst [vmem:[%s2476_s26 + $0x60] sm:$0xff] %v1389_v7  ;;  %v1172_v4 = vmul.f32 0.01, %v1138_v8  ;;  %v1917_v7 = vld [vmem:[%s2267_s20 + $0x1a8] sm:$0xff] }
 0x331   : > { %v1204_v16 = vmax.f32 %v1138_v8, %v1172_v4 }
 0x332   : > { %v1329_v1 = vpop.f32.mrf.mxu0 }
 0x333   : > { %v1330_v59 = vadd.f32 %v1329_v1, %v2471_v23 }
 0x334   : > { %v1139_v10 = vpop.f32.mrf.mxu3 }
 0x335   : > { %v1390_v13 = vmul.f32 %v1904_v12, %v1330_v59  ;;  %v1140_v63 = vadd.f32 %v1139_v10, %v2438_v6  ;;  %v1918_v10 = vld [vmem:[%s2267_s20 + $0x1b8] sm:$0xff] }
 0x337   : > { %1422 = vst [vmem:[%s2476_s26 + $0x68] sm:$0xff] %v1390_v13  ;;  %v1173_v15 = vmul.f32 0.01, %v1140_v63 }
 0x339   : > { %v1205_v11 = vmax.f32 %v1140_v63, %v1173_v15  ;;  %v1919_v63 = vld [vmem:[%s2267_s20 + $0x1c8] sm:$0xff] }
 0x33a   : > { %v1332_v17 = vpop.f32.mrf.mxu0 }
 0x33b   : > { %v1333_v18 = vadd.f32 %v1332_v17, %v2471_v23  ;;  %v1221_v22 = vpack.c.bf16 %v1205_v11, %v1204_v16  ;;  %v1920_v17 = vld [vmem:[%s2267_s20 + $0x1d8] sm:$0xff] }
 0x33d   : > { %v1391_v24 = vmul.f32 %v1905_v30, %v1333_v18  ;;  %1371 = vmatmul.bf16.gmra.mxu0 %v1221_v22 }
 0x33f   : > { %1423 = vst [vmem:[%s2476_s26 + $0x70] sm:$0xff] %v1391_v24  ;;  %v1921_v24 = vld [vmem:[%s2267_s20 + $0x1e8] sm:$0xff] }
 0x342   : > { %v1334_v25 = vpop.f32.mrf.mxu0 }
 0x343   : > { %v1335_v6 = vadd.f32 %v1334_v25, %v2471_v23 }
 0x345   : > { %v1392_v29 = vmul.f32 %v1906_v26, %v1335_v6 }
 0x347   : > { %1424 = vst [vmem:[%s2476_s26 + $0x78] sm:$0xff] %v1392_v29  ;;  %v1922_v29 = vld [vmem:[%s2267_s20 + $0x1f8] sm:$0xff] }
 0x34a   : > { %v1337_v31 = vpop.f32.mrf.mxu0 }
 0x34b   : > { %v1338_v9 = vadd.f32 %v1337_v31, %v2471_v23 }
 0x34d   : > { %v1393_v32 = vmul.f32 %v1907_v20, %v1338_v9 }
 0x34f   : > { %1425 = vst [vmem:[%s2476_s26 + $0x80] sm:$0xff] %v1393_v32 }
 0x352   : > { %v1339_v14 = vpop.f32.mrf.mxu0 }
 0x353   : > { %v1340_v35 = vadd.f32 %v1339_v14, %v2471_v23 }
 0x355   : > { %v1394_v34 = vmul.f32 %v1908_v36, %v1340_v35 }
 0x357   : > { %1426 = vst [vmem:[%s2476_s26 + $0x88] sm:$0xff] %v1394_v34 }
 0x35a   : > { %v1342_v37 = vpop.f32.mrf.mxu0 }
 0x35b   : > { %v1343_v38 = vadd.f32 %v1342_v37, %v2471_v23 }
 0x35d   : > { %v1395_v40 = vmul.f32 %v1909_v39, %v1343_v38 }
 0x35f   : > { %1427 = vst [vmem:[%s2476_s26 + $0x90] sm:$0xff] %v1395_v40 }
 0x362   : > { %v1344_v41 = vpop.f32.mrf.mxu0 }
 0x363   : > { %v1345_v42 = vadd.f32 %v1344_v41, %v2471_v23 }
 0x365   : > { %v1396_v44 = vmul.f32 %v1910_v43, %v1345_v42 }
 0x367   : > { %1428 = vst [vmem:[%s2476_s26 + $0x98] sm:$0xff] %v1396_v44 }
 0x36a   : > { %v1347_v45 = vpop.f32.mrf.mxu0 }
 0x36b   : > { %v1348_v33 = vadd.f32 %v1347_v45, %v2471_v23 }
 0x36d   : > { %v1397_v48 = vmul.f32 %v1911_v46, %v1348_v33 }
 0x36f   : > { %1429 = vst [vmem:[%s2476_s26 + $0xa0] sm:$0xff] %v1397_v48 }
 0x372   : > { %v1349_v19 = vpop.f32.mrf.mxu0 }
 0x373   : > { %v1350_v49 = vadd.f32 %v1349_v19, %v2471_v23 }
 0x375   : > { %v1398_v21 = vmul.f32 %v1912_v50, %v1350_v49 }
 0x377   : > { %1430 = vst [vmem:[%s2476_s26 + $0xa8] sm:$0xff] %v1398_v21 }
 0x37a   : > { %v1352_v47 = vpop.f32.mrf.mxu0 }
 0x37b   : > { %v1353_v51 = vadd.f32 %v1352_v47, %v2471_v23 }
 0x37d   : > { %v1399_v54 = vmul.f32 %v1913_v53, %v1353_v51 }
 0x37f   : > { %1431 = vst [vmem:[%s2476_s26 + $0xb0] sm:$0xff] %v1399_v54 }
 0x382   : > { %v1354_v55 = vpop.f32.mrf.mxu0 }
 0x383   : > { %v1355_v52 = vadd.f32 %v1354_v55, %v2471_v23 }
 0x385   : > { %v1400_v57 = vmul.f32 %v1914_v56, %v1355_v52 }
 0x387   : > { %1432 = vst [vmem:[%s2476_s26 + $0xb8] sm:$0xff] %v1400_v57 }
 0x38a   : > { %v1357_v58 = vpop.f32.mrf.mxu0 }
 0x38b   : > { %v1358_v60 = vadd.f32 %v1357_v58, %v2471_v23 }
 0x38d   : > { %v1401_v62 = vmul.f32 %v1915_v61, %v1358_v60 }
 0x38f   : > { %1433 = vst [vmem:[%s2476_s26 + $0xc0] sm:$0xff] %v1401_v62 }
 0x392   : > { %v1359_v0 = vpop.f32.mrf.mxu0 }
 0x393   : > { %v1360_v27 = vadd.f32 %v1359_v0, %v2471_v23 }
 0x395   : > { %v1402_v28 = vmul.f32 %v1916_v2, %v1360_v27 }
 0x397   : > { %1434 = vst [vmem:[%s2476_s26 + $0xc8] sm:$0xff] %v1402_v28 }
 0x39a   : > { %v1362_v3 = vpop.f32.mrf.mxu0 }
 0x39b   : > { %v1363_v5 = vadd.f32 %v1362_v3, %v2471_v23 }
 0x39d   : > { %v1403_v8 = vmul.f32 %v1917_v7, %v1363_v5 }
 0x39f   : > { %1435 = vst [vmem:[%s2476_s26 + $0xd0] sm:$0xff] %v1403_v8 }
 0x3a2   : > { %v1364_v1 = vpop.f32.mrf.mxu0 }
 0x3a3   : > { %v1365_v59 = vadd.f32 %v1364_v1, %v2471_v23 }
 0x3a5   : > { %v1404_v4 = vmul.f32 %v1918_v10, %v1365_v59 }
 0x3a7   : > { %1436 = vst [vmem:[%s2476_s26 + $0xd8] sm:$0xff] %v1404_v4 }
 0x3aa   : > { %v1367_v12 = vpop.f32.mrf.mxu0 }
 0x3ab   : > { %v1368_v13 = vadd.f32 %v1367_v12, %v2471_v23 }
 0x3ad   : > { %v1405_v15 = vmul.f32 %v1919_v63, %v1368_v13 }
 0x3af   : > { %1437 = vst [vmem:[%s2476_s26 + $0xe0] sm:$0xff] %v1405_v15 }
 0x3b2   : > { %v1369_v16 = vpop.f32.mrf.mxu0 }
 0x3b3   : > { %v1370_v11 = vadd.f32 %v1369_v16, %v2471_v23 }
 0x3b5   : > { %v1406_v18 = vmul.f32 %v1920_v17, %v1370_v11 }
 0x3b7   : > { %1438 = vst [vmem:[%s2476_s26 + $0xe8] sm:$0xff] %v1406_v18 }
 0x3ba   : > { %v1372_v22 = vpop.f32.mrf.mxu0 }
 0x3bb   : > { %v1373_v30 = vadd.f32 %v1372_v22, %v2471_v23 }
 0x3bd   : > { %v1407_v25 = vmul.f32 %v1921_v24, %v1373_v30 }
 0x3bf   : > { %1439 = vst [vmem:[%s2476_s26 + $0xf0] sm:$0xff] %v1407_v25 }
 0x3c2   : > { %v1374_v6 = vpop.f32.mrf.mxu0 }
 0x3c3   : > { %v1375_v26 = vadd.f32 %v1374_v6, %v2471_v23 }
 0x3c5   : > { %v1408_v31 = vmul.f32 %v1922_v29, %v1375_v26 }
 0x3c7   : > { %1440 = vst [vmem:[%s2476_s26 + $0xf8] sm:$0xff] %v1408_v31 }
 0x3c8   : > { %2070 = shalt.err (!%p2067_p10)
}
 0x3c9   : > { %s2126_s8 = smov 128   ;;  %s2127_s20 = smov 8  }
 0x3ca   : > { %1821 = dma.vmem_to_hbm [thread:$0]  (%p2235_p5), %s1455_s24, 4096, %s1457_s25, %s1442_s5, %s2126_s8, %s2126_s8, %s2127_s20  }
 0x3cb PF: > { %p1848_p11 = scmp.ge.s32.totalorder %s2117_s18, 2  ;;  %s1471_s21 = sand.u32 1, %s2105_s15  }
 0x3cc   : > { %s1472_s26 = scalar_lea.sflag [#allocation4], %s1471_s21 }
 0x3cd   : > { %p1838_p12 = pnand %p1848_p11, %p2188_p6 }
 0x3cf   : > { %p1839_p13 = pneg %p1838_p12 }
 0x3d1   : > { %2100 = dma.done.wait (%p1839_p13), %s1472_s26, 4096  }
 0x3d2   : > { %2102 = vsyncadd (%p1839_p13), %s1472_s26, 4294963200  ;;  %p19_p0 = scmp.ge.s32.totalorder %s2219_s23, 6   ;;  %s2630_s15 = smov %s2109_s16 }
 0x3d3   : > { %s2631_s16 = smov %s2113_s17  ;;  %s2632_s17 = smov %s2231_s27 }
 0x3d4   : > { %s2633_s18 = smov %s2219_s23  ;;  %21 = sbr.rel (!%p19_p0) target bundleno = 7 (0x7), region = 95 }
 0x3d9   :  { %1478 = vsyncpa [#allocation3], 1 }
 0x3da   :  { %1480 = vsyncpa [#allocation3 + $0x1], 1 }
 0x3db   :  { %1481 = vsyncpa [#allocation6], 1 }
 0x3dc   :  { %1482 = vsyncpa [#allocation9], 1 }
 0x3dd   :  { %1483 = vsyncpa [#allocation4], 1 }
 0x3de   :  { %1485 = vsyncpa [#allocation4 + $0x1], 1 }

</bundles_post_ra>
